<compile_context>
chip_gen: v7x
topology: tpu7x:2x2x1
jax: 0.10.0
libtpu: 0.0.40
codegen_flags: <defaults>
</compile_context>

<pallas_src>
import numpy as np
import jax
import jax.numpy as jnp
from jax.experimental import pallas as pl
from jax.experimental.pallas import tpu as pltpu


# ----------------------------------------------------------------------------
# Parameter init (PyTorch-default-style uniform), matching the nn.Module spec
# ----------------------------------------------------------------------------
def _uniform(key, shape, fan_in):
    bound = 1.0 / np.sqrt(float(fan_in))
    return jax.random.uniform(key, shape, jnp.float32, -bound, bound)


def init_encoder_params(latent_dim, key):
    ks = jax.random.split(key, 8)
    c1, c2, c3 = latent_dim // 2, latent_dim, latent_dim * 2
    return {
        "conv1_w": _uniform(ks[0], (c1, 1, 3, 3), 1 * 3 * 3),
        "conv1_b": _uniform(ks[1], (c1,), 1 * 3 * 3),
        "conv2_w": _uniform(ks[2], (c2, c1, 3, 3), c1 * 3 * 3),
        "conv2_b": _uniform(ks[3], (c2,), c1 * 3 * 3),
        "conv3_w": _uniform(ks[4], (c3, c2, 7, 7), c2 * 7 * 7),
        "conv3_b": _uniform(ks[5], (c3,), c2 * 7 * 7),
        "fc_w": _uniform(ks[6], (latent_dim, c3), c3),   # torch Linear: (out, in)
        "fc_b": _uniform(ks[7], (latent_dim,), c3),
    }


# ----------------------------------------------------------------------------
# One-time host-side weight folding ("pack").
#
# Activation layout: A[row p, col c*W + q]   (image row p, channel c, column q)
# A KxK conv with stride s / zero-pad `pad` becomes
#     out = relu( sum_{i<K}  Rrow_i @ A @ Cfold_i  + bias_cols )
#   Rrow_i [H_out, H_in]           : selects input row  s*p + i - pad
#   Cfold_i[C_in*W_in, C_out*W_out]: selects input col  s*q + j - pad and
#                                    multiplies by w[o, c, i, j] (summed on j)
# Out-of-range taps are simply absent  ->  implicit zero padding.
# ----------------------------------------------------------------------------
def _fold_conv_layer(w, b, h_in, w_in, stride, pad):
    w = np.asarray(w, np.float32)
    b = np.asarray(b, np.float32)
    c_out, c_in, kh, kw = w.shape
    h_out = (h_in + 2 * pad - kh) // stride + 1
    w_out = (w_in + 2 * pad - kw) // stride + 1

    rrow = np.zeros((kh, h_out, h_in), np.float32)
    for i in range(kh):
        for p in range(h_out):
            r = stride * p + i - pad
            if 0 <= r < h_in:
                rrow[i, p, r] = 1.0

    cfold = np.zeros((kh, c_in * w_in, c_out * w_out), np.float32)
    for i in range(kh):
        for o in range(c_out):
            for c in range(c_in):
                for j in range(kw):
                    for qo in range(w_out):
                        q = stride * qo + j - pad
                        if 0 <= q < w_in:
                            cfold[i, c * w_in + q, o * w_out + qo] += w[o, c, i, j]

    bcols = np.repeat(b, w_out)[None, :]     # (1, C_out*W_out); entry o*W_out+q -> b[o]
    return (jnp.asarray(rrow), jnp.asarray(cfold), jnp.asarray(bcols), h_out, w_out)


def pack_encoder_params(params, h=28, w=28):
    """Fold every weight once (outside the forward pass)."""
    r1, cf1, b1, h1, w1 = _fold_conv_layer(params["conv1_w"], params["conv1_b"], h, w, 2, 1)
    r2, cf2, b2, h2, w2 = _fold_conv_layer(params["conv2_w"], params["conv2_b"], h1, w1, 2, 1)

    # conv3: kernel == full spatial extent (7x7 on a 7x7 map -> 1x1 output).
    # Fold to per-row slabs:  w3fold[p][c*7 + q, o] = conv3_w[o, c, p, q]
    w3 = np.asarray(params["conv3_w"], np.float32)            # (C3, C2, 7, 7)
    kh3, kw3 = w3.shape[2], w3.shape[3]
    assert (kh3, kw3) == (h2, w2), "conv3 kernel must cover the whole map"
    w3fold = np.transpose(w3, (2, 1, 3, 0)).reshape(kh3, w3.shape[1] * kw3, w3.shape[0])
    b3 = np.asarray(params["conv3_b"], np.float32)[None, :]

    wfc = jnp.asarray(params["fc_w"]).T.astype(jnp.float32)   # transpose ONCE here
    bfc = jnp.asarray(params["fc_b"]).reshape(1, -1).astype(jnp.float32)

    return {
        "rrow1": r1, "cfold1": cf1, "b1": b1,
        "rrow2": r2, "cfold2": cf2, "b2": b2,
        "w3": jnp.asarray(w3fold), "b3": jnp.asarray(b3),
        "wfc": wfc, "bfc": bfc,
    }


# ----------------------------------------------------------------------------
# Fused Pallas kernel: one grid step == one image; everything stays in VMEM.
# ----------------------------------------------------------------------------
def _encoder_kernel(x_ref, r1_ref, c1_ref, b1_ref, r2_ref, c2_ref, b2_ref,
                    w3_ref, b3_ref, wfc_ref, bfc_ref, o_ref):
    f32 = jnp.float32
    x = x_ref[0, 0]                                            # (28, 28) image

    # conv1 (3x3, s=2, p=1) + ReLU  ->  a1: (14, c1*14)
    a1 = None
    for i in range(r1_ref.shape[0]):
        t = jnp.dot(x, c1_ref[i], preferred_element_type=f32)           # (28, c1*14)
        t = jnp.dot(r1_ref[i], t, preferred_element_type=f32)           # (14, c1*14)
        a1 = t if a1 is None else a1 + t
    a1 = jnp.maximum(a1 + b1_ref[...], 0.0)

    # conv2 (3x3, s=2, p=1) + ReLU  ->  a2: (7, c2*7)
    a2 = None
    for i in range(r2_ref.shape[0]):
        t = jnp.dot(a1, c2_ref[i], preferred_element_type=f32)          # (14, c2*7)
        t = jnp.dot(r2_ref[i], t, preferred_element_type=f32)           # (7,  c2*7)
        a2 = t if a2 is None else a2 + t
    a2 = jnp.maximum(a2 + b2_ref[...], 0.0)

    # conv3 (7x7 == full map -> 1x1 output) + ReLU  ->  h: (1, c3)
    h = None
    for p in range(w3_ref.shape[0]):
        t = jnp.dot(a2[p:p + 1, :], w3_ref[p], preferred_element_type=f32)
        h = t if h is None else h + t
    h = jnp.maximum(h + b3_ref[...], 0.0)

    # fc (no activation)
    out = jnp.dot(h, wfc_ref[...], preferred_element_type=f32) + bfc_ref[...]
    o_ref[0] = out.astype(o_ref.dtype)


def encoder_forward(packed, x):
    """x: (B, 1, 28, 28) float32 NCHW  ->  (B, latent_dim) float32."""
    b, cin, h, w = x.shape
    assert cin == 1
    latent = packed["bfc"].shape[1]

    const3 = lambda i: (0, 0, 0)
    const2 = lambda i: (0, 0)

    out = pl.pallas_call(
        _encoder_kernel,
        out_shape=jax.ShapeDtypeStruct((b, 1, latent), jnp.float32),
        grid=(b,),
        in_specs=[
            pl.BlockSpec((1, 1, h, w), lambda i: (i, 0, 0, 0)),
            pl.BlockSpec(packed["rrow1"].shape, const3),
            pl.BlockSpec(packed["cfold1"].shape, const3),
            pl.BlockSpec(packed["b1"].shape, const2),
            pl.BlockSpec(packed["rrow2"].shape, const3),
            pl.BlockSpec(packed["cfold2"].shape, const3),
            pl.BlockSpec(packed["b2"].shape, const2),
            pl.BlockSpec(packed["w3"].shape, const3),
            pl.BlockSpec(packed["b3"].shape, const2),
            pl.BlockSpec(packed["wfc"].shape, const2),
            pl.BlockSpec(packed["bfc"].shape, const2),
        ],
        out_specs=pl.BlockSpec((1, 1, latent), lambda i: (i, 0, 0)),
        compiler_params=pltpu.CompilerParams(
            dimension_semantics=("parallel",),   # batch shards across v7x's 2 TCs
        ),
    )(x.astype(jnp.float32),
      packed["rrow1"], packed["cfold1"], packed["b1"],
      packed["rrow2"], packed["cfold2"], packed["b2"],
      packed["w3"], packed["b3"], packed["wfc"], packed["bfc"])
    return out.reshape(b, latent)


# ----------------------------------------------------------------------------
# Plain-JAX reference (in-script correctness check)
# ----------------------------------------------------------------------------
def encoder_forward_ref(params, x):
    dn = ("NCHW", "OIHW", "NCHW")
    hp = jax.lax.Precision.HIGHEST

    def conv(x, w, b, stride, pad):
        y = jax.lax.conv_general_dilated(
            x, w, window_strides=(stride, stride),
            padding=[(pad, pad), (pad, pad)], dimension_numbers=dn, precision=hp)
        return jax.nn.relu(y + b[None, :, None, None])

    h = conv(x, params["conv1_w"], params["conv1_b"], 2, 1)
    h = conv(h, params["conv2_w"], params["conv2_b"], 2, 1)
    h = conv(h, params["conv3_w"], params["conv3_b"], 1, 0)
    h = h.reshape(h.shape[0], -1)
    return jnp.dot(h, params["fc_w"].T, precision=hp) + params["fc_b"]


if __name__ == "__main__":
    latent_dim = 32          # small, consistent with the module (MNIST 28x28 input)
    key = jax.random.PRNGKey(0)
    k_param, k_x = jax.random.split(key)

    params = init_encoder_params(latent_dim, k_param)
    packed = pack_encoder_params(params)                      # one-time weight folding
    x = jax.random.normal(k_x, (2, 1, 28, 28), jnp.float32)

    out = jax.block_until_ready(encoder_forward(packed, x))

    ref = encoder_forward_ref(params, x)
    assert out.shape == (2, latent_dim), out.shape
    max_err = float(jnp.max(jnp.abs(out - ref)))
    assert jnp.allclose(out, ref, atol=1e-3, rtol=1e-3), max_err

    print("KERNEL_OK")
</pallas_src>

<mosaic_0001>
module attributes {stable_mosaic.version = 11 : i64} {
  func.func @_encoder_kernel(%arg0: i32, %arg1: memref<1x1x28x28xf32, #tpu.memory_space<vmem>>, %arg2: memref<3x14x28xf32, #tpu.memory_space<vmem>>, %arg3: memref<3x28x224xf32, #tpu.memory_space<vmem>>, %arg4: memref<1x224xf32, #tpu.memory_space<vmem>>, %arg5: memref<3x7x14xf32, #tpu.memory_space<vmem>>, %arg6: memref<3x224x224xf32, #tpu.memory_space<vmem>>, %arg7: memref<1x224xf32, #tpu.memory_space<vmem>>, %arg8: memref<7x224x64xf32, #tpu.memory_space<vmem>>, %arg9: memref<1x64xf32, #tpu.memory_space<vmem>>, %arg10: memref<64x32xf32, #tpu.memory_space<vmem>>, %arg11: memref<1x32xf32, #tpu.memory_space<vmem>>, %arg12: memref<1x1x32xf32, #tpu.memory_space<vmem>>) attributes {dimension_semantics = [#tpu.dimension_semantics<parallel>], iteration_bounds = array<i64: 2>, scalar_prefetch = 0 : i64, scratch_operands = 0 : i64, tpu.core_type = #tpu.core_type<tc>, window_params = [{transform_indices = @transform_0, window_bounds = array<i64: 1, 1, 28, 28>}, {pipeline_mode = #tpu.pipeline_mode<synchronous>, transform_indices = @transform_1, window_bounds = array<i64: 3, 14, 28>}, {pipeline_mode = #tpu.pipeline_mode<synchronous>, transform_indices = @transform_2, window_bounds = array<i64: 3, 28, 224>}, {pipeline_mode = #tpu.pipeline_mode<synchronous>, transform_indices = @transform_3, window_bounds = array<i64: 1, 224>}, {pipeline_mode = #tpu.pipeline_mode<synchronous>, transform_indices = @transform_4, window_bounds = array<i64: 3, 7, 14>}, {pipeline_mode = #tpu.pipeline_mode<synchronous>, transform_indices = @transform_5, window_bounds = array<i64: 3, 224, 224>}, {pipeline_mode = #tpu.pipeline_mode<synchronous>, transform_indices = @transform_6, window_bounds = array<i64: 1, 224>}, {pipeline_mode = #tpu.pipeline_mode<synchronous>, transform_indices = @transform_7, window_bounds = array<i64: 7, 224, 64>}, {pipeline_mode = #tpu.pipeline_mode<synchronous>, transform_indices = @transform_8, window_bounds = array<i64: 1, 64>}, {pipeline_mode = #tpu.pipeline_mode<synchronous>, transform_indices = @transform_9, window_bounds = array<i64: 64, 32>}, {pipeline_mode = #tpu.pipeline_mode<synchronous>, transform_indices = @transform_10, window_bounds = array<i64: 1, 32>}, {transform_indices = @transform_11, window_bounds = array<i64: 1, 1, 32>}]} {
    %c0 = arith.constant 0 : index
    %c0_0 = arith.constant 0 : index
    %c0_1 = arith.constant 0 : index
    %c0_2 = arith.constant 0 : index
    %0 = vector.load %arg1[%c0, %c0_0, %c0_1, %c0_2] : memref<1x1x28x28xf32, #tpu.memory_space<vmem>>, vector<1x1x28x28xf32>
    %1 = vector.shape_cast %0 : vector<1x1x28x28xf32> to vector<28x28xf32>
    %c0_3 = arith.constant 0 : index
    %c0_4 = arith.constant 0 : index
    %c0_5 = arith.constant 0 : index
    %2 = vector.load %arg3[%c0_3, %c0_4, %c0_5] : memref<3x28x224xf32, #tpu.memory_space<vmem>>, vector<1x28x224xf32>
    %3 = vector.shape_cast %2 : vector<1x28x224xf32> to vector<28x224xf32>
    %cst = arith.constant dense<0.000000e+00> : vector<28x224xf32>
    %4 = tpu.matmul %1, %3, %cst {dimension_numbers = #tpu.dot_dimension_numbers<[1], [0], [0], [1], [0, 0, 1, 1], [], []>} : vector<28x28xf32>, vector<28x224xf32>, vector<28x224xf32> -> vector<28x224xf32>
    %c0_6 = arith.constant 0 : index
    %c0_7 = arith.constant 0 : index
    %c0_8 = arith.constant 0 : index
    %5 = vector.load %arg2[%c0_6, %c0_7, %c0_8] : memref<3x14x28xf32, #tpu.memory_space<vmem>>, vector<1x14x28xf32>
    %6 = vector.shape_cast %5 : vector<1x14x28xf32> to vector<14x28xf32>
    %cst_9 = arith.constant dense<0.000000e+00> : vector<14x224xf32>
    %7 = tpu.matmul %6, %4, %cst_9 {dimension_numbers = #tpu.dot_dimension_numbers<[1], [0], [0], [1], [0, 0, 1, 1], [], []>} : vector<14x28xf32>, vector<28x224xf32>, vector<14x224xf32> -> vector<14x224xf32>
    %c1 = arith.constant 1 : index
    %c0_10 = arith.constant 0 : index
    %c0_11 = arith.constant 0 : index
    %8 = vector.load %arg3[%c1, %c0_10, %c0_11] : memref<3x28x224xf32, #tpu.memory_space<vmem>>, vector<1x28x224xf32>
    %9 = vector.shape_cast %8 : vector<1x28x224xf32> to vector<28x224xf32>
    %cst_12 = arith.constant dense<0.000000e+00> : vector<28x224xf32>
    %10 = tpu.matmul %1, %9, %cst_12 {dimension_numbers = #tpu.dot_dimension_numbers<[1], [0], [0], [1], [0, 0, 1, 1], [], []>} : vector<28x28xf32>, vector<28x224xf32>, vector<28x224xf32> -> vector<28x224xf32>
    %c1_13 = arith.constant 1 : index
    %c0_14 = arith.constant 0 : index
    %c0_15 = arith.constant 0 : index
    %11 = vector.load %arg2[%c1_13, %c0_14, %c0_15] : memref<3x14x28xf32, #tpu.memory_space<vmem>>, vector<1x14x28xf32>
    %12 = vector.shape_cast %11 : vector<1x14x28xf32> to vector<14x28xf32>
    %cst_16 = arith.constant dense<0.000000e+00> : vector<14x224xf32>
    %13 = tpu.matmul %12, %10, %cst_16 {dimension_numbers = #tpu.dot_dimension_numbers<[1], [0], [0], [1], [0, 0, 1, 1], [], []>} : vector<14x28xf32>, vector<28x224xf32>, vector<14x224xf32> -> vector<14x224xf32>
    %14 = arith.addf %7, %13 : vector<14x224xf32>
    %c2 = arith.constant 2 : index
    %c0_17 = arith.constant 0 : index
    %c0_18 = arith.constant 0 : index
    %15 = vector.load %arg3[%c2, %c0_17, %c0_18] : memref<3x28x224xf32, #tpu.memory_space<vmem>>, vector<1x28x224xf32>
    %16 = vector.shape_cast %15 : vector<1x28x224xf32> to vector<28x224xf32>
    %cst_19 = arith.constant dense<0.000000e+00> : vector<28x224xf32>
    %17 = tpu.matmul %1, %16, %cst_19 {dimension_numbers = #tpu.dot_dimension_numbers<[1], [0], [0], [1], [0, 0, 1, 1], [], []>} : vector<28x28xf32>, vector<28x224xf32>, vector<28x224xf32> -> vector<28x224xf32>
    %c2_20 = arith.constant 2 : index
    %c0_21 = arith.constant 0 : index
    %c0_22 = arith.constant 0 : index
    %18 = vector.load %arg2[%c2_20, %c0_21, %c0_22] : memref<3x14x28xf32, #tpu.memory_space<vmem>>, vector<1x14x28xf32>
    %19 = vector.shape_cast %18 : vector<1x14x28xf32> to vector<14x28xf32>
    %cst_23 = arith.constant dense<0.000000e+00> : vector<14x224xf32>
    %20 = tpu.matmul %19, %17, %cst_23 {dimension_numbers = #tpu.dot_dimension_numbers<[1], [0], [0], [1], [0, 0, 1, 1], [], []>} : vector<14x28xf32>, vector<28x224xf32>, vector<14x224xf32> -> vector<14x224xf32>
    %21 = arith.addf %14, %20 : vector<14x224xf32>
    %c0_24 = arith.constant 0 : index
    %c0_25 = arith.constant 0 : index
    %22 = vector.load %arg4[%c0_24, %c0_25] : memref<1x224xf32, #tpu.memory_space<vmem>>, vector<1x224xf32>
    %23 = vector.broadcast %22 : vector<1x224xf32> to vector<14x224xf32>
    %24 = arith.addf %21, %23 : vector<14x224xf32>
    %cst_26 = arith.constant 0.000000e+00 : f32
    %25 = vector.broadcast %cst_26 : f32 to vector<14x224xf32>
    %26 = arith.maximumf %24, %25 : vector<14x224xf32>
    %c0_27 = arith.constant 0 : index
    %c0_28 = arith.constant 0 : index
    %c0_29 = arith.constant 0 : index
    %27 = vector.load %arg6[%c0_27, %c0_28, %c0_29] : memref<3x224x224xf32, #tpu.memory_space<vmem>>, vector<1x224x224xf32>
    %28 = vector.shape_cast %27 : vector<1x224x224xf32> to vector<224x224xf32>
    %cst_30 = arith.constant dense<0.000000e+00> : vector<14x224xf32>
    %29 = tpu.matmul %26, %28, %cst_30 {dimension_numbers = #tpu.dot_dimension_numbers<[1], [0], [0], [1], [0, 0, 1, 1], [], []>} : vector<14x224xf32>, vector<224x224xf32>, vector<14x224xf32> -> vector<14x224xf32>
    %c0_31 = arith.constant 0 : index
    %c0_32 = arith.constant 0 : index
    %c0_33 = arith.constant 0 : index
    %30 = vector.load %arg5[%c0_31, %c0_32, %c0_33] : memref<3x7x14xf32, #tpu.memory_space<vmem>>, vector<1x7x14xf32>
    %31 = vector.shape_cast %30 : vector<1x7x14xf32> to vector<7x14xf32>
    %cst_34 = arith.constant dense<0.000000e+00> : vector<7x224xf32>
    %32 = tpu.matmul %31, %29, %cst_34 {dimension_numbers = #tpu.dot_dimension_numbers<[1], [0], [0], [1], [0, 0, 1, 1], [], []>} : vector<7x14xf32>, vector<14x224xf32>, vector<7x224xf32> -> vector<7x224xf32>
    %c1_35 = arith.constant 1 : index
    %c0_36 = arith.constant 0 : index
    %c0_37 = arith.constant 0 : index
    %33 = vector.load %arg6[%c1_35, %c0_36, %c0_37] : memref<3x224x224xf32, #tpu.memory_space<vmem>>, vector<1x224x224xf32>
    %34 = vector.shape_cast %33 : vector<1x224x224xf32> to vector<224x224xf32>
    %cst_38 = arith.constant dense<0.000000e+00> : vector<14x224xf32>
    %35 = tpu.matmul %26, %34, %cst_38 {dimension_numbers = #tpu.dot_dimension_numbers<[1], [0], [0], [1], [0, 0, 1, 1], [], []>} : vector<14x224xf32>, vector<224x224xf32>, vector<14x224xf32> -> vector<14x224xf32>
    %c1_39 = arith.constant 1 : index
    %c0_40 = arith.constant 0 : index
    %c0_41 = arith.constant 0 : index
    %36 = vector.load %arg5[%c1_39, %c0_40, %c0_41] : memref<3x7x14xf32, #tpu.memory_space<vmem>>, vector<1x7x14xf32>
    %37 = vector.shape_cast %36 : vector<1x7x14xf32> to vector<7x14xf32>
    %cst_42 = arith.constant dense<0.000000e+00> : vector<7x224xf32>
    %38 = tpu.matmul %37, %35, %cst_42 {dimension_numbers = #tpu.dot_dimension_numbers<[1], [0], [0], [1], [0, 0, 1, 1], [], []>} : vector<7x14xf32>, vector<14x224xf32>, vector<7x224xf32> -> vector<7x224xf32>
    %39 = arith.addf %32, %38 : vector<7x224xf32>
    %c2_43 = arith.constant 2 : index
    %c0_44 = arith.constant 0 : index
    %c0_45 = arith.constant 0 : index
    %40 = vector.load %arg6[%c2_43, %c0_44, %c0_45] : memref<3x224x224xf32, #tpu.memory_space<vmem>>, vector<1x224x224xf32>
    %41 = vector.shape_cast %40 : vector<1x224x224xf32> to vector<224x224xf32>
    %cst_46 = arith.constant dense<0.000000e+00> : vector<14x224xf32>
    %42 = tpu.matmul %26, %41, %cst_46 {dimension_numbers = #tpu.dot_dimension_numbers<[1], [0], [0], [1], [0, 0, 1, 1], [], []>} : vector<14x224xf32>, vector<224x224xf32>, vector<14x224xf32> -> vector<14x224xf32>
    %c2_47 = arith.constant 2 : index
    %c0_48 = arith.constant 0 : index
    %c0_49 = arith.constant 0 : index
    %43 = vector.load %arg5[%c2_47, %c0_48, %c0_49] : memref<3x7x14xf32, #tpu.memory_space<vmem>>, vector<1x7x14xf32>
    %44 = vector.shape_cast %43 : vector<1x7x14xf32> to vector<7x14xf32>
    %cst_50 = arith.constant dense<0.000000e+00> : vector<7x224xf32>
    %45 = tpu.matmul %44, %42, %cst_50 {dimension_numbers = #tpu.dot_dimension_numbers<[1], [0], [0], [1], [0, 0, 1, 1], [], []>} : vector<7x14xf32>, vector<14x224xf32>, vector<7x224xf32> -> vector<7x224xf32>
    %46 = arith.addf %39, %45 : vector<7x224xf32>
    %c0_51 = arith.constant 0 : index
    %c0_52 = arith.constant 0 : index
    %47 = vector.load %arg7[%c0_51, %c0_52] : memref<1x224xf32, #tpu.memory_space<vmem>>, vector<1x224xf32>
    %48 = vector.broadcast %47 : vector<1x224xf32> to vector<7x224xf32>
    %49 = arith.addf %46, %48 : vector<7x224xf32>
    %cst_53 = arith.constant 0.000000e+00 : f32
    %50 = vector.broadcast %cst_53 : f32 to vector<7x224xf32>
    %51 = arith.maximumf %49, %50 : vector<7x224xf32>
    %52 = vector.extract_strided_slice %51 {offsets = [0, 0], sizes = [1, 224], strides = [1, 1]} : vector<7x224xf32> to vector<1x224xf32>
    %c0_54 = arith.constant 0 : index
    %c0_55 = arith.constant 0 : index
    %c0_56 = arith.constant 0 : index
    %53 = vector.load %arg8[%c0_54, %c0_55, %c0_56] : memref<7x224x64xf32, #tpu.memory_space<vmem>>, vector<1x224x64xf32>
    %54 = vector.shape_cast %53 : vector<1x224x64xf32> to vector<224x64xf32>
    %cst_57 = arith.constant dense<0.000000e+00> : vector<1x64xf32>
    %55 = tpu.matmul %52, %54, %cst_57 {dimension_numbers = #tpu.dot_dimension_numbers<[1], [0], [0], [1], [0, 0, 1, 1], [], []>} : vector<1x224xf32>, vector<224x64xf32>, vector<1x64xf32> -> vector<1x64xf32>
    %56 = vector.extract_strided_slice %51 {offsets = [1, 0], sizes = [1, 224], strides = [1, 1]} : vector<7x224xf32> to vector<1x224xf32>
    %c1_58 = arith.constant 1 : index
    %c0_59 = arith.constant 0 : index
    %c0_60 = arith.constant 0 : index
    %57 = vector.load %arg8[%c1_58, %c0_59, %c0_60] : memref<7x224x64xf32, #tpu.memory_space<vmem>>, vector<1x224x64xf32>
    %58 = vector.shape_cast %57 : vector<1x224x64xf32> to vector<224x64xf32>
    %cst_61 = arith.constant dense<0.000000e+00> : vector<1x64xf32>
    %59 = tpu.matmul %56, %58, %cst_61 {dimension_numbers = #tpu.dot_dimension_numbers<[1], [0], [0], [1], [0, 0, 1, 1], [], []>} : vector<1x224xf32>, vector<224x64xf32>, vector<1x64xf32> -> vector<1x64xf32>
    %60 = arith.addf %55, %59 : vector<1x64xf32>
    %61 = vector.extract_strided_slice %51 {offsets = [2, 0], sizes = [1, 224], strides = [1, 1]} : vector<7x224xf32> to vector<1x224xf32>
    %c2_62 = arith.constant 2 : index
    %c0_63 = arith.constant 0 : index
    %c0_64 = arith.constant 0 : index
    %62 = vector.load %arg8[%c2_62, %c0_63, %c0_64] : memref<7x224x64xf32, #tpu.memory_space<vmem>>, vector<1x224x64xf32>
    %63 = vector.shape_cast %62 : vector<1x224x64xf32> to vector<224x64xf32>
    %cst_65 = arith.constant dense<0.000000e+00> : vector<1x64xf32>
    %64 = tpu.matmul %61, %63, %cst_65 {dimension_numbers = #tpu.dot_dimension_numbers<[1], [0], [0], [1], [0, 0, 1, 1], [], []>} : vector<1x224xf32>, vector<224x64xf32>, vector<1x64xf32> -> vector<1x64xf32>
    %65 = arith.addf %60, %64 : vector<1x64xf32>
    %66 = vector.extract_strided_slice %51 {offsets = [3, 0], sizes = [1, 224], strides = [1, 1]} : vector<7x224xf32> to vector<1x224xf32>
    %c3 = arith.constant 3 : index
    %c0_66 = arith.constant 0 : index
    %c0_67 = arith.constant 0 : index
    %67 = vector.load %arg8[%c3, %c0_66, %c0_67] : memref<7x224x64xf32, #tpu.memory_space<vmem>>, vector<1x224x64xf32>
    %68 = vector.shape_cast %67 : vector<1x224x64xf32> to vector<224x64xf32>
    %cst_68 = arith.constant dense<0.000000e+00> : vector<1x64xf32>
    %69 = tpu.matmul %66, %68, %cst_68 {dimension_numbers = #tpu.dot_dimension_numbers<[1], [0], [0], [1], [0, 0, 1, 1], [], []>} : vector<1x224xf32>, vector<224x64xf32>, vector<1x64xf32> -> vector<1x64xf32>
    %70 = arith.addf %65, %69 : vector<1x64xf32>
    %71 = vector.extract_strided_slice %51 {offsets = [4, 0], sizes = [1, 224], strides = [1, 1]} : vector<7x224xf32> to vector<1x224xf32>
    %c4 = arith.constant 4 : index
    %c0_69 = arith.constant 0 : index
    %c0_70 = arith.constant 0 : index
    %72 = vector.load %arg8[%c4, %c0_69, %c0_70] : memref<7x224x64xf32, #tpu.memory_space<vmem>>, vector<1x224x64xf32>
    %73 = vector.shape_cast %72 : vector<1x224x64xf32> to vector<224x64xf32>
    %cst_71 = arith.constant dense<0.000000e+00> : vector<1x64xf32>
    %74 = tpu.matmul %71, %73, %cst_71 {dimension_numbers = #tpu.dot_dimension_numbers<[1], [0], [0], [1], [0, 0, 1, 1], [], []>} : vector<1x224xf32>, vector<224x64xf32>, vector<1x64xf32> -> vector<1x64xf32>
    %75 = arith.addf %70, %74 : vector<1x64xf32>
    %76 = vector.extract_strided_slice %51 {offsets = [5, 0], sizes = [1, 224], strides = [1, 1]} : vector<7x224xf32> to vector<1x224xf32>
    %c5 = arith.constant 5 : index
    %c0_72 = arith.constant 0 : index
    %c0_73 = arith.constant 0 : index
    %77 = vector.load %arg8[%c5, %c0_72, %c0_73] : memref<7x224x64xf32, #tpu.memory_space<vmem>>, vector<1x224x64xf32>
    %78 = vector.shape_cast %77 : vector<1x224x64xf32> to vector<224x64xf32>
    %cst_74 = arith.constant dense<0.000000e+00> : vector<1x64xf32>
    %79 = tpu.matmul %76, %78, %cst_74 {dimension_numbers = #tpu.dot_dimension_numbers<[1], [0], [0], [1], [0, 0, 1, 1], [], []>} : vector<1x224xf32>, vector<224x64xf32>, vector<1x64xf32> -> vector<1x64xf32>
    %80 = arith.addf %75, %79 : vector<1x64xf32>
    %81 = vector.extract_strided_slice %51 {offsets = [6, 0], sizes = [1, 224], strides = [1, 1]} : vector<7x224xf32> to vector<1x224xf32>
    %c6 = arith.constant 6 : index
    %c0_75 = arith.constant 0 : index
    %c0_76 = arith.constant 0 : index
    %82 = vector.load %arg8[%c6, %c0_75, %c0_76] : memref<7x224x64xf32, #tpu.memory_space<vmem>>, vector<1x224x64xf32>
    %83 = vector.shape_cast %82 : vector<1x224x64xf32> to vector<224x64xf32>
    %cst_77 = arith.constant dense<0.000000e+00> : vector<1x64xf32>
    %84 = tpu.matmul %81, %83, %cst_77 {dimension_numbers = #tpu.dot_dimension_numbers<[1], [0], [0], [1], [0, 0, 1, 1], [], []>} : vector<1x224xf32>, vector<224x64xf32>, vector<1x64xf32> -> vector<1x64xf32>
    %85 = arith.addf %80, %84 : vector<1x64xf32>
    %c0_78 = arith.constant 0 : index
    %c0_79 = arith.constant 0 : index
    %86 = vector.load %arg9[%c0_78, %c0_79] : memref<1x64xf32, #tpu.memory_space<vmem>>, vector<1x64xf32>
    %87 = arith.addf %85, %86 : vector<1x64xf32>
    %cst_80 = arith.constant 0.000000e+00 : f32
    %88 = vector.broadcast %cst_80 : f32 to vector<1x64xf32>
    %89 = arith.maximumf %87, %88 : vector<1x64xf32>
    %c0_81 = arith.constant 0 : index
    %c0_82 = arith.constant 0 : index
    %90 = vector.load %arg10[%c0_81, %c0_82] : memref<64x32xf32, #tpu.memory_space<vmem>>, vector<64x32xf32>
    %cst_83 = arith.constant dense<0.000000e+00> : vector<1x32xf32>
    %91 = tpu.matmul %89, %90, %cst_83 {dimension_numbers = #tpu.dot_dimension_numbers<[1], [0], [0], [1], [0, 0, 1, 1], [], []>} : vector<1x64xf32>, vector<64x32xf32>, vector<1x32xf32> -> vector<1x32xf32>
    %c0_84 = arith.constant 0 : index
    %c0_85 = arith.constant 0 : index
    %92 = vector.load %arg11[%c0_84, %c0_85] : memref<1x32xf32, #tpu.memory_space<vmem>>, vector<1x32xf32>
    %93 = arith.addf %91, %92 : vector<1x32xf32>
    %c0_86 = arith.constant 0 : index
    %c0_87 = arith.constant 0 : index
    %c0_88 = arith.constant 0 : index
    %94 = vector.load %arg12[%c0_86, %c0_87, %c0_88] : memref<1x1x32xf32, #tpu.memory_space<vmem>>, vector<1x1x32xf32>
    %95 = vector.shape_cast %94 : vector<1x1x32xf32> to vector<1x32xf32>
    %96 = vector.shape_cast %93 : vector<1x32xf32> to vector<1x1x32xf32>
    tpu.vector_store %arg12[%c0_86, %c0_87, %c0_88], %96 {strides = array<i32>} : memref<1x1x32xf32, #tpu.memory_space<vmem>>, vector<1x1x32xf32>,
    return
  }
  func.func @transform_0(%arg0: i32) -> (i32, i32, i32, i32) {
    %c0_i32 = arith.constant 0 : i32
    %c0_i32_0 = arith.constant 0 : i32
    %c0_i32_1 = arith.constant 0 : i32
    %c0_i32_2 = arith.constant 0 : i32
    return %arg0, %c0_i32, %c0_i32_0, %c0_i32_1 : i32, i32, i32, i32
  }
  func.func @transform_1(%arg0: i32) -> (i32, i32, i32) {
    %c0_i32 = arith.constant 0 : i32
    %c0_i32_0 = arith.constant 0 : i32
    %c0_i32_1 = arith.constant 0 : i32
    %c0_i32_2 = arith.constant 0 : i32
    return %c0_i32, %c0_i32_0, %c0_i32_1 : i32, i32, i32
  }
  func.func @transform_2(%arg0: i32) -> (i32, i32, i32) {
    %c0_i32 = arith.constant 0 : i32
    %c0_i32_0 = arith.constant 0 : i32
    %c0_i32_1 = arith.constant 0 : i32
    %c0_i32_2 = arith.constant 0 : i32
    return %c0_i32, %c0_i32_0, %c0_i32_1 : i32, i32, i32
  }
  func.func @transform_3(%arg0: i32) -> (i32, i32) {
    %c0_i32 = arith.constant 0 : i32
    %c0_i32_0 = arith.constant 0 : i32
    %c0_i32_1 = arith.constant 0 : i32
    return %c0_i32, %c0_i32_0 : i32, i32
  }
  func.func @transform_4(%arg0: i32) -> (i32, i32, i32) {
    %c0_i32 = arith.constant 0 : i32
    %c0_i32_0 = arith.constant 0 : i32
    %c0_i32_1 = arith.constant 0 : i32
    %c0_i32_2 = arith.constant 0 : i32
    return %c0_i32, %c0_i32_0, %c0_i32_1 : i32, i32, i32
  }
  func.func @transform_5(%arg0: i32) -> (i32, i32, i32) {
    %c0_i32 = arith.constant 0 : i32
    %c0_i32_0 = arith.constant 0 : i32
    %c0_i32_1 = arith.constant 0 : i32
    %c0_i32_2 = arith.constant 0 : i32
    return %c0_i32, %c0_i32_0, %c0_i32_1 : i32, i32, i32
  }
  func.func @transform_6(%arg0: i32) -> (i32, i32) {
    %c0_i32 = arith.constant 0 : i32
    %c0_i32_0 = arith.constant 0 : i32
    %c0_i32_1 = arith.constant 0 : i32
    return %c0_i32, %c0_i32_0 : i32, i32
  }
  func.func @transform_7(%arg0: i32) -> (i32, i32, i32) {
    %c0_i32 = arith.constant 0 : i32
    %c0_i32_0 = arith.constant 0 : i32
    %c0_i32_1 = arith.constant 0 : i32
    %c0_i32_2 = arith.constant 0 : i32
    return %c0_i32, %c0_i32_0, %c0_i32_1 : i32, i32, i32
  }
  func.func @transform_8(%arg0: i32) -> (i32, i32) {
    %c0_i32 = arith.constant 0 : i32
    %c0_i32_0 = arith.constant 0 : i32
    %c0_i32_1 = arith.constant 0 : i32
    return %c0_i32, %c0_i32_0 : i32, i32
  }
  func.func @transform_9(%arg0: i32) -> (i32, i32) {
    %c0_i32 = arith.constant 0 : i32
    %c0_i32_0 = arith.constant 0 : i32
    %c0_i32_1 = arith.constant 0 : i32
    return %c0_i32, %c0_i32_0 : i32, i32
  }
  func.func @transform_10(%arg0: i32) -> (i32, i32) {
    %c0_i32 = arith.constant 0 : i32
    %c0_i32_0 = arith.constant 0 : i32
    %c0_i32_1 = arith.constant 0 : i32
    return %c0_i32, %c0_i32_0 : i32, i32
  }
  func.func @transform_11(%arg0: i32) -> (i32, i32, i32) {
    %c0_i32 = arith.constant 0 : i32
    %c0_i32_0 = arith.constant 0 : i32
    %c0_i32_1 = arith.constant 0 : i32
    return %arg0, %c0_i32, %c0_i32_0 : i32, i32, i32
  }
}

</mosaic_0001>

<bundles_post_ra>
// kernel: tpu_custom_call.1
= control target key start
LH: loop header
LB: loop body
LE: loop exit
PB: predicated region body
PF: predicated region fallthrough
CT: control target
= control target key end

     0   :  { %16 = vsyncpa [#allocation3], 0  ;;  %s5285_s0 = inlined_call_operand.vmem [shape: f32[2,1,28,28], index: 0, kind: input, shape index: {}]   ;;  %s5286_s1 = inlined_call_operand.vmem [shape: f32[3,14,28], index: 1, kind: input, shape index: {}]   ;;  %s5287_s2 = inlined_call_operand.vmem [shape: f32[3,28,224], index: 2, kind: input, shape index: {}]   ;;  %s5288_s3 = inlined_call_operand.vmem [shape: f32[1,224], index: 3, kind: input, shape index: {}]   ;;  %s5289_s4 = inlined_call_operand.vmem [shape: f32[3,7,14], index: 4, kind: input, shape index: {}]   ;;  %s5290_s5 = inlined_call_operand.vmem [shape: f32[3,224,224], index: 5, kind: input, shape index: {}]   ;;  %s5291_s6 = inlined_call_operand.vmem [shape: f32[1,224], index: 6, kind: input, shape index: {}]   ;;  %s5292_s7 = inlined_call_operand.vmem [shape: f32[7,224,64], index: 7, kind: input, shape index: {}]   ;;  %s5293_s8 = inlined_call_operand.vmem [shape: f32[1,64], index: 8, kind: input, shape index: {}]   ;;  %s5294_s9 = inlined_call_operand.vmem [shape: f32[64,32], index: 9, kind: input, shape index: {}]   ;;  %s5295_s10 = inlined_call_operand.vmem [shape: f32[1,32], index: 10, kind: input, shape index: {}]   ;;  %s5296_s11 = inlined_call_operand.hbm [shape: f32[2,1,32], index: 11, kind: output, shape index: {}]  }
   0x1   :  { %18 = vsyncpa [#allocation3 + $0x1], 0  ;;  %s3705_s17 = smov 0   ;;  %s3707_s18 = smov 0  }
   0x2   :  { %s3709_s19 = smov 0   ;;  %s3711_s20 = smov 0  }
   0x3 LB: > { %5298 = sst [smem:[#allocation5_spill]] %s3634_s19  ;;  %s3726_s21 = sadd.s32 4294967295, %s3638_s20   ;;  %s3638_s20 = sphi %s3711_s20, %s5310_s20   ;;  %s3634_s19 = sphi %s3709_s19, %s5307_s19   ;;  %s3630_s18 = sphi %s3707_s18, %s5309_s18   ;;  %s3626_s17 = sphi %s3705_s17, %s5308_s17  }
   0x4   : > { %s2572_s22 = sadd.s32 4294967294, %s3638_s20   ;;  %s3730_s23 = sadd.s32 1, %s3638_s20  }
   0x5   : > { %s267_s24 = sadd.s32 1, %s3634_s19  ;;  %s264_s25 = ssub.s32 %s3638_s20, %s3730_s23 }
   0x6   : > { %p277_p0 = scmp.ne.s32.totalorder %s3634_s19, %s3630_s18  ;;  %p265_p1 = scmp.eq.s32.totalorder %s264_s25, 0 }
   0x7   : > { %p278_p2 = scmp.eq.s32.totalorder %s3726_s21, 1  ;;  %p283_p3 = scmp.ne.s32.totalorder %s3630_s18, %s3626_s17 }
   0x8   : > { %p284_p4 = scmp.eq.s32.totalorder %s2572_s22, 1  ;;  %p2575_p7 = scmp.ge.s32.totalorder %s3638_s20, 1 }
   0x9   : > { %s3741_s26 = scalar_select %p265_p1, %s3634_s19, %s267_s24  }
   0xa   : > { %p3743_p5 = por %p278_p2, %p277_p0  ;;  %p3747_p6 = por %p284_p4, %p283_p3 }
   0xb   : > { %5299 = sst [smem:[#allocation6_spill]] %s3741_s26  ;;  %p340_p8 = scmp.lt.s32.totalorder %s3638_s20, 3 }
   0xd   : > { %p341_p9 = pnand %p2575_p7, %p340_p8 }
   0xe   : > { %v389_v0 = vld [vmem:[%s5287_s2 + $0x8] sm:$0xff] (!%p341_p9)  ;;  %v391_v1 = vld [vmem:[%s5287_s2 + $0x18] sm:$0xff] (!%p341_p9)  ;;  %v388_v2 = vld [vmem:[%s5287_s2] sm:$0xff] (!%p341_p9)  ;;  %vm409_vm0 = vcmask (!%p341_p9), 1043456   ;;  %v3640_v7 = vmov (!%p341_p9), 0.0   ;;  %p379_p10 = scmp.lt.s32.totalorder (!%p341_p9), %s3726_s21, 1 }
   0xf   : > { %344 = sbr.rel (%p341_p9) target bundleno = 1846 (0x736), region = 64  ;;  %v2965_v3 = vpack.c.bf16 (!%p341_p9), %v391_v1, %v389_v0  ;;  %v390_v4 = vld [vmem:[%s5287_s2 + $0x10] sm:$0xff] (!%p341_p9)  ;;  %v393_v5 = vld [vmem:[%s5287_s2 + $0x28] sm:$0xff] (!%p341_p9)  ;;  %v395_v6 = vld [vmem:[%s5287_s2 + $0x38] sm:$0xf] (!%p341_p9)  ;;  %492 = vmatprep.mubr.f32.mxu1 (!%p341_p9), %v3640_v7  ;;  %480 = vmatprep.mubr.f32.mxu0 (!%p341_p9), %v3640_v7  ;;  %vm3641_vm1 = vmmov (!%p341_p9), 1  }
  0x10   : > { %v2967_v8 = vpack.c.bf16 (!%p341_p9), %v390_v4, %v388_v2  ;;  %v2969_v9 = vpack.c.bf16 (!%p341_p9), %v395_v6, %v393_v5  ;;  %vm3775_vm2 = vmpackc.low (!%p341_p9), %vm409_vm0, %vm3641_vm1  ;;  %v392_v11 = vld [vmem:[%s5287_s2 + $0x20] sm:$0xff] (!%p341_p9)  ;;  %v394_v12 = vld [vmem:[%s5287_s2 + $0x30] sm:$0xf] (!%p341_p9)  ;;  %vm396_vm3 = vcmask (!%p341_p9), 228352   ;;  %vm1068_vm4 = vcmask (!%p341_p9), 785408   ;;  %s377_s24 = sand.u32 (!%p341_p9), 1, %s3630_s18  }
  0x11   : > { %3517 = vmatprep.subr.bf16.mxu1 (!%p341_p9), %v2965_v3  ;;  %v2585_v13 = vld [vmem:[%s5287_s2 + $0x48] sm:$0xff] (!%p341_p9)  ;;  %v2587_v14 = vld [vmem:[%s5287_s2 + $0x58] sm:$0xff] (!%p341_p9)  ;;  %2966 = vmatprep.subr.bf16.mxu0 (!%p341_p9), %v2965_v3  ;;  %v2972_v15 = vpack.c.bf16 (!%p341_p9), %v394_v12, %v392_v11  ;;  %v2584_v17 = vld [vmem:[%s5287_s2 + $0x40] sm:$0xff] (!%p341_p9)  ;;  %vm1293_vm5 = vcmask (!%p341_p9), 1045504   ;;  %vm1289_vm7 = vcmask (!%p341_p9), 113664   ;;  %vm3643_vm8 = vmmov (!%p341_p9), 0  }
  0x12   : > { %3519 = vmatpush1.bf16.msra.mxu1 (!%p341_p9), %v2967_v8  ;;  %2968 = vmatpush1.bf16.msra.mxu0 (!%p341_p9), %v2967_v8  ;;  %v2975_v16 = vpack.c.bf16 (!%p341_p9), %v2587_v14, %v2585_v13  ;;  %v2586_v18 = vld [vmem:[%s5287_s2 + $0x50] sm:$0xff] (!%p341_p9)  ;;  %v2589_v19 = vld [vmem:[%s5287_s2 + $0x68] sm:$0xff] (!%p341_p9)  ;;  %v2591_v20 = vld [vmem:[%s5287_s2 + $0x78] sm:$0xf] (!%p341_p9)  ;;  %vm2428_vm9 = vcmask (!%p341_p9), 523264   ;;  %s378_s12 = scalar_lea.vmem (!%p341_p9), [#allocation2], %s377_s24 }
  0x13   : > { %3518 = vmatprep.subr.msk.bf16.mxu1 (!%p341_p9), %vm3775_vm2, %v2969_v9  ;;  %2971 = vmatprep.subr.msk.bf16.mxu0 (!%p341_p9), %vm3775_vm2, %v2969_v9  ;;  %v2977_v22 = vpack.c.bf16 (!%p341_p9), %v2586_v18, %v2584_v17  ;;  %v2979_v23 = vpack.c.bf16 (!%p341_p9), %v2591_v20, %v2589_v19  ;;  %v2588_v24 = vld [vmem:[%s5287_s2 + $0x60] sm:$0xff] (!%p341_p9)  ;;  %v2590_v25 = vld [vmem:[%s5287_s2 + $0x70] sm:$0xf] (!%p341_p9)  ;;  %v2609_v27 = vld [vmem:[%s5287_s2 + $0x88] sm:$0xff] (!%p341_p9)  ;;  %s2517_s26 = sshll.u32 (!%p341_p9), %s378_s12, 4  ;;  %vm2502_vm10 = vcmask (!%p341_p9), 253952   ;;  %s5245_s26 = int_to_ptr.vmem [resolvable:$true] %s2517_s26 }
  0x14   : > { %v2611_v28 = vld [vmem:[%s5287_s2 + $0x98] sm:$0xff] (!%p341_p9)  ;;  %v2982_v30 = vpack.c.bf16 (!%p341_p9), %v2590_v25, %v2588_v24  ;;  %v2608_v32 = vld [vmem:[%s5287_s2 + $0x80] sm:$0xff] (!%p341_p9)  ;;  %v2610_v33 = vld [vmem:[%s5287_s2 + $0x90] sm:$0xff] (!%p341_p9)  ;;  %s2505_s14 = scalar_lea.sflag (!%p341_p9), [#allocation3], %s377_s24  ;;  %s3576_s15 = scalar_lea.vmem (!%p341_p9), %s5245_s26, 16 }
  0x15   : > { %v3005_v31 = vpack.c.bf16 (!%p341_p9), %v2611_v28, %v2609_v27  ;;  %v2613_v35 = vld [vmem:[%s5287_s2 + $0xa8] sm:$0xff] (!%p341_p9)  ;;  %v2615_v36 = vld [vmem:[%s5287_s2 + $0xb8] sm:$0xf] (!%p341_p9)  ;;  %v3007_v37 = vpack.c.bf16 (!%p341_p9), %v2610_v33, %v2608_v32  ;;  %v2612_v39 = vld [vmem:[%s5287_s2 + $0xa0] sm:$0xff] (!%p341_p9)  ;;  %p3577_p11 = scmp.ne.s32.totalorder (!%p341_p9), %s5245_s26, %s3576_s15 }
  0x16   : > { %s380_s16 = scalar_select %p379_p10, %s3726_s21, 1  ;;  %3520 = vmatpush1.bf16.msk.msra.mxu1 %vm3775_vm2, %v2972_v15  ;;  %2974 = vmatpush1.bf16.msk.msra.mxu0 %vm3775_vm2, %v2972_v15  ;;  %v3009_v38 = vpack.c.bf16 %v2615_v36, %v2613_v35  ;;  %v2614_v40 = vld [vmem:[%s5287_s2 + $0xb0] sm:$0xf]  ;;  %v1013_v42 = vld [vmem:[%s5290_s5 + $0x8] sm:$0xff]  ;;  %v1015_v43 = vld [vmem:[%s5290_s5 + $0x18] sm:$0xff] }
  0x17   : > { %2976 = vmatprep.subr.bf16.mxu1 %v2975_v16  ;;  %v3012_v41 = vpack.c.bf16 %v2614_v40, %v2612_v39  ;;  %v3025_v44 = vpack.c.bf16 %v1015_v43, %v1013_v42  ;;  %v1012_v45 = vld [vmem:[%s5290_s5] sm:$0xff]  ;;  %v1014_v46 = vld [vmem:[%s5290_s5 + $0x10] sm:$0xff]  ;;  %v1017_v48 = vld [vmem:[%s5290_s5 + $0x28] sm:$0xff]  ;;  %p3578_p12 = pnand %p3577_p11, %p3743_p5 }
  0x18   : > { %s2936_s30 = sshll.u32 %s380_s16, 5  ;;  %v3027_v47 = vpack.c.bf16 %v1014_v46, %v1012_v45  ;;  %v1019_v49 = vld [vmem:[%s5290_s5 + $0x38] sm:$0xff]  ;;  %v1016_v51 = vld [vmem:[%s5290_s5 + $0x20] sm:$0xff]  ;;  %v1018_v52 = vld [vmem:[%s5290_s5 + $0x30] sm:$0xff] }
  0x19   : > { %s383_s25 = scalar_lea.vmem %s5285_s0, %s2936_s30  ;;  %v3029_v50 = vpack.c.bf16 %v1019_v49, %v1017_v48  ;;  %v3031_v53 = vpack.c.bf16 %v1018_v52, %v1016_v51  ;;  %v1021_v54 = vld [vmem:[%s5290_s5 + $0x48] sm:$0xff]  ;;  %v1023_v55 = vld [vmem:[%s5290_s5 + $0x58] sm:$0xff]  ;;  %v1020_v57 = vld [vmem:[%s5290_s5 + $0x40] sm:$0xff]  ;;  %s2933_s30 = sshll.u32 %s3726_s21, 4 }
  0x1a   : > { %v386_v21 = vld [vmem:[%s383_s25 + $0x10] sm:$0xff]  ;;  %v384_v26 = vld [vmem:[%s383_s25] sm:$0xff]  ;;  %v387_v29 = vld [vmem:[%s383_s25 + $0x18] sm:$0xf]  ;;  %v3033_v56 = vpack.c.bf16 %v1023_v55, %v1021_v54  ;;  %p3579_p13 = pneg %p3578_p12  ;;  %s3644_s21 = smov [#allocation2]  }
  0x1b   : > { %2582 = vmatmul.mubr.msk.f32.vlgmr.msra.gmra.mrb[0].mxu1 %vm396_vm3, %v386_v21  ;;  %2580 = vmatmul.mubr.msk.f32.vlgmr.msra.gmra.mrb[0].mxu0 %vm396_vm3, %v384_v26  ;;  %v385_v34 = vld [vmem:[%s383_s25 + $0x8] sm:$0xff]  ;;  %v1022_v58 = vld [vmem:[%s5290_s5 + $0x50] sm:$0xff]  ;;  %v1027_v61 = vld [vmem:[%s5290_s5 + $0x78] sm:$0xff]  ;;  %s5243_s25 = scalar_lea.hbm %s5296_s11, %s2933_s30  ;;  %s3580_s22 = sshll.u32 %s3644_s21, 4  ;;  %s3581_s22 = int_to_ptr.vmem [resolvable:$false] %s3580_s22 }
  0x1c   : > { %2978 = vmatpush1.bf16.msra.mxu1 %v2977_v22  ;;  %498 = vmatprep.mubr.f32.mxu1 %v3640_v7  ;;  %v3035_v59 = vpack.c.bf16 %v1022_v58, %v1020_v57  ;;  %v1025_v60 = vld [vmem:[%s5290_s5 + $0x68] sm:$0xff]  ;;  %v1024_v63 = vld [vmem:[%s5290_s5 + $0x60] sm:$0xff]  ;;  %v1026_v0 = vld [vmem:[%s5290_s5 + $0x70] sm:$0xff]  ;;  %s3582_s29 = scalar_lea.vmem %s3581_s22, 32  ;;  %p3583_p0 = scmp.lt.s32.totalorder %s5245_s26, %s3581_s22 }
  0x1d   : > { %2981 = vmatprep.subr.msk.bf16.mxu1 %vm3775_vm2, %v2979_v23  ;;  %486 = vmatprep.mubr.f32.mxu0 %v3640_v7  ;;  %v3037_v62 = vpack.c.bf16 %v1027_v61, %v1025_v60  ;;  %v1029_v1 = vld [vmem:[%s5290_s5 + $0x88] sm:$0xff]  ;;  %v1031_v2 = vld [vmem:[%s5290_s5 + $0x98] sm:$0xff]  ;;  %v3039_v3 = vpack.c.bf16 %v1026_v0, %v1024_v63  ;;  %v1028_v5 = vld [vmem:[%s5290_s5 + $0x80] sm:$0xff]  ;;  %p3584_p1 = scmp.lt.s32.totalorder %s3582_s29, %s3576_s15 }
  0x1e   : > { %v3041_v4 = vpack.c.bf16 %v1031_v2, %v1029_v1  ;;  %v1030_v6 = vld [vmem:[%s5290_s5 + $0x90] sm:$0xff]  ;;  %v1033_v8 = vld [vmem:[%s5290_s5 + $0xa8] sm:$0xff]  ;;  %v1035_v9 = vld [vmem:[%s5290_s5 + $0xb8] sm:$0xff] }
  0x1f   : > { %2583 = vmatmul.mubr.msk.f32.gmra.mrb[2].mxu1 %vm396_vm3, %v387_v29  ;;  %2581 = vmatmul.mubr.msk.f32.gmra.mrb[2].mxu0 %vm396_vm3, %v385_v34  ;;  %v3043_v11 = vpack.c.bf16 %v1030_v6, %v1028_v5  ;;  %v3045_v12 = vpack.c.bf16 %v1035_v9, %v1033_v8  ;;  %v1032_v13 = vld [vmem:[%s5290_s5 + $0xa0] sm:$0xff]  ;;  %v1034_v14 = vld [vmem:[%s5290_s5 + $0xb0] sm:$0xff]  ;;  %v1037_v15 = vld [vmem:[%s5290_s5 + $0xc8] sm:$0xff]  ;;  %p3585_p2 = por %p3584_p1, %p3583_p0 }
  0x20   : > { %2984 = vmatpush1.bf16.msk.msra.mxu1 %vm3775_vm2, %v2982_v30  ;;  %586 = vmatprep.mubr.f32.mxu1 %v3640_v7  ;;  %v1039_v16 = vld [vmem:[%s5290_s5 + $0xd8] sm:$0xff]  ;;  %v3047_v17 = vpack.c.bf16 %v1034_v14, %v1032_v13  ;;  %v1036_v19 = vld [vmem:[%s5290_s5 + $0xc0] sm:$0xff]  ;;  %v1038_v20 = vld [vmem:[%s5290_s5 + $0xd0] sm:$0xff] }
  0x21   : > { %3006 = vmatprep.subr.bf16.mxu1 %v3005_v31  ;;  %690 = vmatprep.mubr.f32.mxu0 %v3640_v7  ;;  %v3049_v18 = vpack.c.bf16 %v1039_v16, %v1037_v15  ;;  %v1043_v22 = vld [vmem:[%s5290_s5 + $0xf8] sm:$0xff]  ;;  %v3051_v23 = vpack.c.bf16 %v1038_v20, %v1036_v19  ;;  %v1040_v25 = vld [vmem:[%s5290_s5 + $0xe0] sm:$0xff]  ;;  %v1045_v27 = vld [vmem:[%s5290_s5 + $0x108] sm:$0xff]  ;;  %p3586_p3 = pnand %p3585_p2, %p3579_p13 }
  0x22   : > { %v1047_v28 = vld [vmem:[%s5290_s5 + $0x118] sm:$0xff]  ;;  %v1044_v31 = vld [vmem:[%s5290_s5 + $0x100] sm:$0xff]  ;;  %v1046_v32 = vld [vmem:[%s5290_s5 + $0x110] sm:$0xff] }
  0x23   : > { %2594 = vmatmul.mubr.msk.f32.vlgmr.msra.gmra.mrb[4].mxu1 %vm396_vm3, %v384_v26  ;;  %v3057_v30 = vpack.c.bf16 %v1047_v28, %v1045_v27  ;;  %v1049_v33 = vld [vmem:[%s5290_s5 + $0x128] sm:$0xff]  ;;  %v3059_v35 = vpack.c.bf16 %v1046_v32, %v1044_v31  ;;  %v1055_v40 = vld [vmem:[%s5290_s5 + $0x158] sm:$0xff]  ;;  %v1052_v43 = vld [vmem:[%s5290_s5 + $0x140] sm:$0xff] }
  0x24   : > { %592 = vmatprep.mubr.f32.mxu1 %v3640_v7  ;;  %3008 = vmatpush1.bf16.msra.mxu1 %v3007_v37  ;;  %v1048_v37 = vld [vmem:[%s5290_s5 + $0x120] sm:$0xff]  ;;  %v1053_v39 = vld [vmem:[%s5290_s5 + $0x148] sm:$0xff]  ;;  %v1059_v46 = vld [vmem:[%s5290_s5 + $0x178] sm:$0xff] }
  0x25   : > { %3011 = vmatprep.subr.msk.bf16.mxu1 %vm3775_vm2, %v3009_v38  ;;  %v1050_v38 = vld [vmem:[%s5290_s5 + $0x130] sm:$0xff]  ;;  %v3065_v42 = vpack.c.bf16 %v1055_v40, %v1053_v39  ;;  %v1057_v45 = vld [vmem:[%s5290_s5 + $0x168] sm:$0xff]  ;;  %v1056_v49 = vld [vmem:[%s5290_s5 + $0x160] sm:$0xff] }
  0x26   : > { %v3069_v48 = vpack.c.bf16 %v1059_v46, %v1057_v45  ;;  %v1061_v51 = vld [vmem:[%s5290_s5 + $0x188] sm:$0xff]  ;;  %v1063_v52 = vld [vmem:[%s5290_s5 + $0x198] sm:$0xff]  ;;  %v2598_v19 = vld [vmem:[%s5286_s1 + $0x10] sm:$0xff] }
  0x27   : > { %2595 = vmatmul.mubr.msk.f32.gmra.mrb[6].mxu1 %vm396_vm3, %v385_v34  ;;  %v3073_v54 = vpack.c.bf16 %v1063_v52, %v1061_v51  ;;  %v505_v27 = vld [vmem:[%s5286_s1] sm:$0xff]  ;;  %v2631_v28 = vld [vmem:[%s5290_s5 + $0x1c8] sm:$0xff]  ;;  %v2637_v39 = vld [vmem:[%s5290_s5 + $0x1f8] sm:$0xff] }
  0x28   : > { %598 = vmatprep.mubr.f32.mxu1 %v3640_v7  ;;  %3014 = vmatpush1.bf16.msk.msra.mxu1 %vm3775_vm2, %v3012_v41  ;;  %v3063_v41 = vpack.c.bf16 %v1050_v38, %v1048_v37  ;;  %v2632_v37 = vld [vmem:[%s5290_s5 + $0x1d0] sm:$0xff]  ;;  %v2635_v38 = vld [vmem:[%s5290_s5 + $0x1e8] sm:$0xff]  ;;  %v2622_v40 = vld [vmem:[%s5286_s1 + $0x20] sm:$0xff] }
  0x29   : > { %3026 = vmatprep.subr.bf16.mxu1 %v3025_v44  ;;  %v1054_v44 = vld [vmem:[%s5290_s5 + $0x150] sm:$0xff]  ;;  %v2639_v10 = vld [vmem:[%s5290_s5 + $0x208] sm:$0xff]  ;;  %v2641_v45 = vld [vmem:[%s5290_s5 + $0x218] sm:$0xff] }
  0x2a   : > { %v2623_v46 = vld [vmem:[%s5286_s1 + $0x28] sm:$0x3f]  ;;  %v2645_v52 = vld [vmem:[%s5290_s5 + $0x238] sm:$0xff]  ;;  %vm4282_vm6 = vmpackc.low %vm1293_vm5, %vm3641_vm1 }
  0x2b   : > { %2596 = vmatmul.mubr.msk.f32.gmra.mrb[8].mxu1 %vm396_vm3, %v386_v21  ;;  %v2643_v51 = vld [vmem:[%s5290_s5 + $0x228] sm:$0xff] }
  0x2c   : > { %604 = vmatprep.mubr.f32.mxu1 %v3640_v7 }
  0x2f   : > { %2597 = vmatmul.mubr.msk.f32.gmra.mrb[10].mxu1 %vm396_vm3, %v387_v29 }
  0x30   : > { %871 = vmatprep.mubr.f32.mxu1 %v3640_v7 }
  0x33   : > { %2618 = vmatmul.mubr.msk.f32.vlgmr.msra.gmra.mrb[12].mxu1 %vm396_vm3, %v384_v26  ;;  %v1042_v26 = vld [vmem:[%s5290_s5 + $0xf0] sm:$0xff] }
  0x34   : > { %877 = vmatprep.mubr.f32.mxu1 %v3640_v7  ;;  %3028 = vmatpush1.bf16.msra.mxu1 %v3027_v47  ;;  %v3067_v47 = vpack.c.bf16 %v1054_v44, %v1052_v43  ;;  %v2634_v43 = vld [vmem:[%s5290_s5 + $0x1e0] sm:$0xff]  ;;  %v2636_v44 = vld [vmem:[%s5290_s5 + $0x1f0] sm:$0xff] }
  0x35   : > { %3030 = vmatprep.subr.bf16.mxu1 %v3029_v50  ;;  %v1058_v50 = vld [vmem:[%s5290_s5 + $0x170] sm:$0xff] }
  0x37   : > { %2619 = vmatmul.mubr.msk.f32.gmra.mrb[14].mxu1 %vm396_vm3, %v385_v34  ;;  %v1051_v34 = vld [vmem:[%s5290_s5 + $0x138] sm:$0xff] }
  0x38   : > { %883 = vmatprep.mubr.f32.mxu1 %v3640_v7  ;;  %3032 = vmatpush1.bf16.msra.mxu1 %v3031_v53  ;;  %v3061_v36 = vpack.c.bf16 %v1051_v34, %v1049_v33  ;;  %v3071_v53 = vpack.c.bf16 %v1058_v50, %v1056_v49  ;;  %v506_v33 = vld [vmem:[%s5286_s1 + $0x8] sm:$0x3f]  ;;  %v2638_v49 = vld [vmem:[%s5290_s5 + $0x200] sm:$0xff]  ;;  %v2640_v50 = vld [vmem:[%s5290_s5 + $0x210] sm:$0xff] }
  0x39   : > { %3034 = vmatprep.subr.bf16.mxu1 %v3033_v56 }
  0x3b   : > { %2620 = vmatmul.mubr.msk.f32.gmra.mrb[16].mxu1 %vm396_vm3, %v386_v21  ;;  %v1041_v21 = vld [vmem:[%s5290_s5 + $0xe8] sm:$0xff] }
  0x3c   : > { %889 = vmatprep.mubr.f32.mxu1 %v3640_v7  ;;  %3036 = vmatpush1.bf16.msra.mxu1 %v3035_v59  ;;  %v3053_v24 = vpack.c.bf16 %v1043_v22, %v1041_v21 }
  0x3d   : > { %3038 = vmatprep.subr.bf16.mxu1 %v3037_v62 }
  0x3f   : > { %2621 = vmatmul.mubr.msk.f32.gmra.mrb[18].mxu1 %vm396_vm3, %v387_v29  ;;  %v3055_v29 = vpack.c.bf16 %v1042_v26, %v1040_v25 }
  0x40   : > { %3040 = vmatpush1.bf16.msra.mxu1 %v3039_v3 }
  0x41   : > { %3042 = vmatprep.subr.bf16.mxu1 %v3041_v4 }
  0x44   : > { %3044 = vmatpush1.bf16.msra.mxu1 %v3043_v11 }
  0x45   : > { %3046 = vmatprep.subr.bf16.mxu1 %v3045_v12 }
  0x48   : > { %3048 = vmatpush1.bf16.msra.mxu1 %v3047_v17 }
  0x49   : > { %3050 = vmatprep.subr.bf16.mxu1 %v3049_v18 }
  0x4c   : > { %3052 = vmatpush1.bf16.msra.mxu1 %v3051_v23  ;;  %v2599_v23 = vld [vmem:[%s5286_s1 + $0x18] sm:$0x3f] }
  0x4d   : > { %3054 = vmatprep.subr.bf16.mxu1 %v3053_v24 }
  0x50   : > { %3056 = vmatpush1.bf16.msra.mxu1 %v3055_v29  ;;  %v2633_v29 = vld [vmem:[%s5290_s5 + $0x1d8] sm:$0xff] }
  0x51   : > { %3058 = vmatprep.subr.bf16.mxu1 %v3057_v30 }
  0x54   : > { %3060 = vmatpush1.bf16.msra.mxu1 %v3059_v35  ;;  %v3081_v35 = vpack.c.bf16 %v2633_v29, %v2631_v28  ;;  %v2666_v29 = vld [vmem:[%s5290_s5 + $0x2e0] sm:$0xff] }
  0x55   : > { %3062 = vmatprep.subr.bf16.mxu1 %v3061_v36  ;;  %v2630_v36 = vld [vmem:[%s5290_s5 + $0x1c0] sm:$0xff] }
  0x58   : > { %3064 = vmatpush1.bf16.msra.mxu1 %v3063_v41  ;;  %v3083_v41 = vpack.c.bf16 %v2632_v37, %v2630_v36  ;;  %v2672_v36 = vld [vmem:[%s5290_s5 + $0x310] sm:$0xff]  ;;  %v2675_v37 = vld [vmem:[%s5290_s5 + $0x328] sm:$0xff] }
  0x59   : > { %3066 = vmatprep.subr.bf16.mxu1 %v3065_v42  ;;  %v3085_v42 = vpack.c.bf16 %v2637_v39, %v2635_v38  ;;  %v2677_v38 = vld [vmem:[%s5290_s5 + $0x338] sm:$0xff] }
  0x5c   : > { %3068 = vmatpush1.bf16.msra.mxu1 %v3067_v47  ;;  %v3087_v47 = vpack.c.bf16 %v2636_v44, %v2634_v43  ;;  %v2679_v43 = vld [vmem:[%s5290_s5 + $0x348] sm:$0xff]  ;;  %v2681_v44 = vld [vmem:[%s5290_s5 + $0x358] sm:$0xff] }
  0x5d   : > { %3070 = vmatprep.subr.bf16.mxu1 %v3069_v48  ;;  %v3089_v48 = vpack.c.bf16 %v2641_v45, %v2639_v10  ;;  %v3129_v45 = vpack.c.bf16 %v2681_v44, %v2679_v43 }
  0x60   : > { %3072 = vmatpush1.bf16.msra.mxu1 %v3071_v53  ;;  %v3091_v53 = vpack.c.bf16 %v2640_v50, %v2638_v49  ;;  %v2680_v50 = vld [vmem:[%s5290_s5 + $0x350] sm:$0xff] }
  0x61   : > { %3074 = vmatprep.subr.bf16.mxu1 %v3073_v54  ;;  %v3093_v54 = vpack.c.bf16 %v2645_v52, %v2643_v51  ;;  %v1065_v52 = vld [vmem:[%s5290_s5 + $0x1a8] sm:$0xff] }
  0xee   : > { %v494_v55 = vpop.f32.mrb[0].mxu1  ;;  %v482_v56 = vpop.f32.mrb[0].mxu0 }
  0xef   : > { %v496_v57 = vpop.f32.mrb[1].mxu1  ;;  %v484_v58 = vpop.f32.mrb[1].mxu0 }
  0xf2   : > { %v500_v59 = vpop.f32.mrb[2].mxu1  ;;  %v488_v60 = vpop.f32.mrb[2].mxu0 }
  0xf3   : > { %v3002_v61 = vpack.c.bf16 %v500_v59, %v494_v55  ;;  %v502_v62 = vpop.f32.mrb[3].mxu1  ;;  %v2997_v63 = vpack.c.bf16 %v488_v60, %v482_v56  ;;  %v490_v0 = vpop.f32.mrb[3].mxu0  ;;  %v2642_v55 = vld [vmem:[%s5290_s5 + $0x220] sm:$0xff]  ;;  %v2644_v56 = vld [vmem:[%s5290_s5 + $0x230] sm:$0xff] }
  0xf4   : > { %v2999_v1 = vpack.c.bf16 %v502_v62, %v496_v57  ;;  %v2995_v2 = vpack.c.bf16 %v490_v0, %v484_v58  ;;  %v2647_v57 = vld [vmem:[%s5290_s5 + $0x248] sm:$0xff]  ;;  %v2649_v58 = vld [vmem:[%s5290_s5 + $0x258] sm:$0xff]  ;;  %v3095_v59 = vpack.c.bf16 %v2644_v56, %v2642_v55  ;;  %v2648_v62 = vld [vmem:[%s5290_s5 + $0x250] sm:$0xff] }
  0xf5   : > { %v3097_v60 = vpack.c.bf16 %v2649_v58, %v2647_v57  ;;  %v2653_v0 = vld [vmem:[%s5290_s5 + $0x278] sm:$0xff]  ;;  %v1064_v57 = vld [vmem:[%s5290_s5 + $0x1a0] sm:$0xff]  ;;  %v1066_v58 = vld [vmem:[%s5290_s5 + $0x1b0] sm:$0xff] }
  0xf6   : > { %v588_v3 = vpop.f32.mrb[4].mxu1  ;;  %v2685_v56 = vld [vmem:[%s5290_s5 + $0x378] sm:$0xff] }
  0xf7   : > { %v590_v4 = vpop.f32.mrb[5].mxu1 }
  0xfa   : > { %v594_v5 = vpop.f32.mrb[6].mxu1 }
  0xfb   : > { %v2987_v6 = vpack.c.bf16 %v594_v5, %v588_v3  ;;  %v596_v8 = vpop.f32.mrb[7].mxu1  ;;  %v2650_v3 = vld [vmem:[%s5290_s5 + $0x260] sm:$0xff]  ;;  %v2655_v5 = vld [vmem:[%s5290_s5 + $0x288] sm:$0xff] }
  0xfc   : > { %v2985_v9 = vpack.c.bf16 %v596_v8, %v590_v4  ;;  %v2652_v4 = vld [vmem:[%s5290_s5 + $0x270] sm:$0xff] }
  0xfd   : > { %v3103_v8 = vpack.c.bf16 %v2652_v4, %v2650_v3  ;;  %v992_v3 = vld [vmem:[%s5288_s3] sm:$0x3] }
  0xfe   : > { %v600_v11 = vpop.f32.mrb[8].mxu1  ;;  %2986 = vmatprep.subr.bf16.mxu0 %v2985_v9 }
  0xff   : > { %v602_v12 = vpop.f32.mrb[9].mxu1  ;;  %2988 = vmatpush1.bf16.msra.mxu0 %v2987_v6  ;;  %v2657_v6 = vld [vmem:[%s5290_s5 + $0x298] sm:$0xff] }
 0x100   : > { %v3105_v9 = vpack.c.bf16 %v2657_v6, %v2655_v5 }
 0x102   : > { %v606_v13 = vpop.f32.mrb[10].mxu1 }
 0x103   : > { %v2992_v14 = vpack.c.bf16 %v606_v13, %v600_v11  ;;  %v608_v15 = vpop.f32.mrb[11].mxu1  ;;  %v2654_v11 = vld [vmem:[%s5290_s5 + $0x280] sm:$0xff]  ;;  %v2659_v13 = vld [vmem:[%s5290_s5 + $0x2a8] sm:$0xff] }
 0x104   : > { %v2989_v16 = vpack.c.bf16 %v608_v15, %v602_v12  ;;  %v2656_v12 = vld [vmem:[%s5290_s5 + $0x290] sm:$0xff] }
 0x105   : > { %v3107_v15 = vpack.c.bf16 %v2656_v12, %v2654_v11 }
 0x106   : > { %2991 = vmatprep.subr.msk.bf16.mxu0 %vm3775_vm2, %v2989_v16  ;;  %v873_v17 = vpop.f32.mrb[12].mxu1 }
 0x107   : > { %2994 = vmatpush1.bf16.msk.msra.mxu0 %vm3775_vm2, %v2992_v14  ;;  %v875_v18 = vpop.f32.mrb[13].mxu1  ;;  %v2661_v14 = vld [vmem:[%s5290_s5 + $0x2b8] sm:$0xff] }
 0x108   : > { %2996 = vmatprep.subr.bf16.mxu0 %v2995_v2  ;;  %v3109_v16 = vpack.c.bf16 %v2661_v14, %v2659_v13 }
 0x10a   : > { %2602 = vmatmul.mubr.msk.f32.vlgmr.msra.gmra.mrb[4].mxu0 %vm396_vm3, %v2598_v19  ;;  %v879_v20 = vpop.f32.mrb[14].mxu1  ;;  %v2663_v19 = vld [vmem:[%s5290_s5 + $0x2c8] sm:$0xff] }
 0x10b   : > { %v3017_v21 = vpack.c.bf16 %v879_v20, %v873_v17  ;;  %2998 = vmatpush1.bf16.msra.mxu0 %v2997_v63  ;;  %v881_v22 = vpop.f32.mrb[15].mxu1  ;;  %696 = vmatprep.mubr.f32.mxu0 %v3640_v7  ;;  %v2651_v63 = vld [vmem:[%s5290_s5 + $0x268] sm:$0xff]  ;;  %v2658_v17 = vld [vmem:[%s5290_s5 + $0x2a0] sm:$0xff]  ;;  %v2665_v20 = vld [vmem:[%s5290_s5 + $0x2d8] sm:$0xff] }
 0x10c   : > { %v3015_v24 = vpack.c.bf16 %v881_v22, %v875_v18  ;;  %3001 = vmatprep.subr.msk.bf16.mxu0 %vm3775_vm2, %v2999_v1  ;;  %v3101_v2 = vpack.c.bf16 %v2653_v0, %v2651_v63  ;;  %v2660_v18 = vld [vmem:[%s5290_s5 + $0x2b0] sm:$0xff]  ;;  %v3113_v22 = vpack.c.bf16 %v2665_v20, %v2663_v19  ;;  %v994_v0 = vlaneseq }
 0x10e   : > { %2603 = vmatmul.mubr.msk.f32.gmra.mrb[6].mxu0 %vm396_vm3, %v2599_v23  ;;  %v885_v25 = vpop.f32.mrb[16].mxu1  ;;  %v2662_v23 = vld [vmem:[%s5290_s5 + $0x2c0] sm:$0xff] }
 0x10f   : > { %3004 = vmatpush1.bf16.msk.msra.mxu0 %vm3775_vm2, %v3002_v61  ;;  %v887_v26 = vpop.f32.mrb[17].mxu1  ;;  %779 = vmatprep.mubr.f32.mxu0 %v3640_v7  ;;  %v2646_v61 = vld [vmem:[%s5290_s5 + $0x240] sm:$0xff] }
 0x110   : > { %3016 = vmatprep.subr.bf16.mxu0 %v3015_v24  ;;  %v3099_v1 = vpack.c.bf16 %v2648_v62, %v2646_v61  ;;  %v2664_v24 = vld [vmem:[%s5290_s5 + $0x2d0] sm:$0xff]  ;;  %v2682_v61 = vld [vmem:[%s5290_s5 + $0x360] sm:$0xff] }
 0x111   : > { %v2684_v62 = vld [vmem:[%s5290_s5 + $0x370] sm:$0xff] }
 0x112   : > { %2606 = vmatmul.mubr.msk.f32.vlgmr.msra.gmra.mrb[4].mxu0 %vm396_vm3, %v505_v27  ;;  %v891_v30 = vpop.f32.mrb[18].mxu1  ;;  %v3115_v27 = vpack.c.bf16 %v2664_v24, %v2662_v23  ;;  %v3135_v63 = vpack.c.bf16 %v2684_v62, %v2682_v61  ;;  %v2711_v62 = vld [vmem:[%s5290_s5 + $0x400] sm:$0xff] }
 0x113   : > { %v3022_v31 = vpack.c.bf16 %v891_v30, %v885_v25  ;;  %v893_v32 = vpop.f32.mrb[19].mxu1  ;;  %3018 = vmatpush1.bf16.msra.mxu0 %v3017_v21  ;;  %785 = vmatprep.mubr.f32.mxu0 %v3640_v7  ;;  %v3111_v21 = vpack.c.bf16 %v2660_v18, %v2658_v17  ;;  %v2667_v25 = vld [vmem:[%s5290_s5 + $0x2e8] sm:$0xff]  ;;  %v2668_v30 = vld [vmem:[%s5290_s5 + $0x2f0] sm:$0xff] }
 0x114   : > { %v3019_v34 = vpack.c.bf16 %v893_v32, %v887_v26  ;;  %v2669_v26 = vld [vmem:[%s5290_s5 + $0x2f8] sm:$0xff] }
 0x115   : > { %v3117_v28 = vpack.c.bf16 %v2669_v26, %v2667_v25  ;;  %v2673_v32 = vld [vmem:[%s5290_s5 + $0x318] sm:$0xff] }
 0x116   : > { %2607 = vmatmul.mubr.msk.f32.gmra.mrb[6].mxu0 %vm396_vm3, %v506_v33  ;;  %3021 = vmatprep.subr.msk.bf16.mxu0 %vm3775_vm2, %v3019_v34  ;;  %v3119_v33 = vpack.c.bf16 %v2668_v30, %v2666_v29 }
 0x117   : > { %3024 = vmatpush1.bf16.msk.msra.mxu0 %vm3775_vm2, %v3022_v31  ;;  %975 = vmatprep.mubr.f32.mxu0 %v3640_v7  ;;  %v2671_v31 = vld [vmem:[%s5290_s5 + $0x308] sm:$0xff] }
 0x118   : > { %3082 = vmatprep.subr.bf16.mxu0 %v3081_v35  ;;  %v3121_v34 = vpack.c.bf16 %v2673_v32, %v2671_v31  ;;  %v2670_v35 = vld [vmem:[%s5290_s5 + $0x300] sm:$0xff] }
 0x119   : > { %v3123_v39 = vpack.c.bf16 %v2672_v36, %v2670_v35  ;;  %v2698_v35 = vld [vmem:[%s5290_s5 + $0x398] sm:$0xff]  ;;  %v2688_v36 = vld [vmem:[%s5289_s4 + $0x8] sm:$0x7f] }
 0x11a   : > { %2626 = vmatmul.mubr.msk.f32.vlgmr.msra.gmra.mrb[4].mxu0 %vm396_vm3, %v2622_v40  ;;  %v3125_v40 = vpack.c.bf16 %v2677_v38, %v2675_v37  ;;  %v2695_v38 = vld [vmem:[%s5290_s5 + $0x380] sm:$0xff] }
 0x11b   : > { %981 = vmatprep.mubr.f32.mxu0 %v3640_v7  ;;  %3084 = vmatpush1.bf16.msra.mxu0 %v3083_v41  ;;  %v2674_v41 = vld [vmem:[%s5290_s5 + $0x320] sm:$0xff] }
 0x11c   : > { %3086 = vmatprep.subr.bf16.mxu0 %v3085_v42  ;;  %v2676_v42 = vld [vmem:[%s5290_s5 + $0x330] sm:$0xff] }
 0x11d   : > { %v3127_v10 = vpack.c.bf16 %v2676_v42, %v2674_v41  ;;  %v2702_v41 = vld [vmem:[%s5290_s5 + $0x3b8] sm:$0xff]  ;;  %v1152_v42 = vld [vmem:[%s5289_s4] sm:$0x7f] }
 0x11e   : > { %2627 = vmatmul.mubr.msk.f32.gmra.mrb[6].mxu0 %vm396_vm3, %v2623_v46  ;;  %v1060_v46 = vld [vmem:[%s5290_s5 + $0x180] sm:$0xff] }
 0x11f   : > { %3088 = vmatpush1.bf16.msra.mxu0 %v3087_v47  ;;  %v1062_v47 = vld [vmem:[%s5290_s5 + $0x190] sm:$0xff] }
 0x120   : > { %3090 = vmatprep.subr.bf16.mxu0 %v3089_v48  ;;  %v2678_v48 = vld [vmem:[%s5290_s5 + $0x340] sm:$0xff]  ;;  %v3075_v49 = vpack.c.bf16 %v1062_v47, %v1060_v46  ;;  %v2704_v46 = vld [vmem:[%s5290_s5 + $0x3c8] sm:$0xff]  ;;  %v2706_v47 = vld [vmem:[%s5290_s5 + $0x3d8] sm:$0xff] }
 0x121   : > { %v3131_v51 = vpack.c.bf16 %v2680_v50, %v2678_v48  ;;  %v2703_v50 = vld [vmem:[%s5290_s5 + $0x3c0] sm:$0xff] }
 0x122   : > { %3076 = vmatpush1.bf16.msra.mxu1 %v3075_v49  ;;  %v3157_v49 = vpack.c.bf16 %v2706_v47, %v2704_v46 }
 0x123   : > { %3092 = vmatpush1.bf16.msra.mxu0 %v3091_v53  ;;  %v1067_v53 = vld [vmem:[%s5290_s5 + $0x1b8] sm:$0xff] }
 0x124   : > { %3094 = vmatprep.subr.bf16.mxu0 %v3093_v54  ;;  %v2683_v54 = vld [vmem:[%s5290_s5 + $0x368] sm:$0xff]  ;;  %v3077_v55 = vpack.c.bf16 %v1067_v53, %v1065_v52  ;;  %v2710_v53 = vld [vmem:[%s5290_s5 + $0x3f8] sm:$0xff] }
 0x125   : > { %v2708_v52 = vld [vmem:[%s5290_s5 + $0x3e8] sm:$0xff] }
 0x126   : > { %3078 = vmatprep.subr.bf16.mxu1 %v3077_v55  ;;  %v3161_v55 = vpack.c.bf16 %v2710_v53, %v2708_v52 }
 0x127   : > { %3096 = vmatpush1.bf16.msra.mxu0 %v3095_v59  ;;  %v3133_v59 = vpack.c.bf16 %v2685_v56, %v2683_v54  ;;  %v2707_v56 = vld [vmem:[%s5290_s5 + $0x3e0] sm:$0xff] }
 0x128   : > { %3098 = vmatprep.subr.bf16.mxu0 %v3097_v60  ;;  %v3079_v60 = vpack.c.bf16 %v1066_v58, %v1064_v57  ;;  %v2709_v57 = vld [vmem:[%s5290_s5 + $0x3f0] sm:$0xff]  ;;  %v2712_v58 = vld [vmem:[%s5290_s5 + $0x408] sm:$0xff] }
 0x12a   : > { %3080 = vmatpush1.bf16.msra.mxu1 %v3079_v60  ;;  %v3163_v60 = vpack.c.bf16 %v2709_v57, %v2707_v56  ;;  %v2748_v56 = vld [vmem:[%s5290_s5 + $0x528] sm:$0xff]  ;;  %v2750_v57 = vld [vmem:[%s5290_s5 + $0x538] sm:$0xff] }
 0x12b   : > { %3100 = vmatpush1.bf16.msra.mxu0 %v3099_v1  ;;  %v4253_v1 = vshrl.u32 %v994_v0, 7  ;;  %v2716_v0 = vld [vmem:[%s5290_s5 + $0x428] sm:$0xff] }
 0x12c   : > { %3102 = vmatprep.subr.bf16.mxu0 %v3101_v2 }
 0x12d   : > { %v996_v2 = vsub.s32 0, %v4253_v1  ;;  %v1000_v4 = vsub.s32 1, %v4253_v1  ;;  %v2846_v1 = vld [vmem:[%s5292_s7 + $0x388] sm:$0xff] }
 0x12f   : > { %3104 = vmatpush1.bf16.msra.mxu0 %v3103_v8  ;;  %v997_v5 = vrot.slane %v992_v3, %v996_v2  ;;  %v1001_v6 = vrot.slane %v992_v3, %v1000_v4  ;;  %v2718_v3 = vld [vmem:[%s5290_s5 + $0x438] sm:$0xff] }
 0x130   : > { %3106 = vmatprep.subr.bf16.mxu0 %v3105_v9 }
 0x133   : > { %3108 = vmatpush1.bf16.msra.mxu0 %v3107_v15 }
 0x134   : > { %3110 = vmatprep.subr.bf16.mxu0 %v3109_v16 }
 0x137   : > { %3112 = vmatpush1.bf16.msra.mxu0 %v3111_v21 }
 0x138   : > { %3114 = vmatprep.subr.bf16.mxu0 %v3113_v22 }
 0x13b   : > { %3116 = vmatpush1.bf16.msra.mxu0 %v3115_v27 }
 0x13c   : > { %3118 = vmatprep.subr.bf16.mxu0 %v3117_v28 }
 0x13f   : > { %3120 = vmatpush1.bf16.msra.mxu0 %v3119_v33 }
 0x140   : > { %3122 = vmatprep.subr.bf16.mxu0 %v3121_v34  ;;  %v2696_v34 = vld [vmem:[%s5290_s5 + $0x388] sm:$0xff] }
 0x141   : > { %v3149_v37 = vpack.c.bf16 %v2698_v35, %v2696_v34  ;;  %v2734_v34 = vld [vmem:[%s5290_s5 + $0x4b8] sm:$0xff] }
 0x143   : > { %3124 = vmatpush1.bf16.msra.mxu0 %v3123_v39  ;;  %v2697_v39 = vld [vmem:[%s5290_s5 + $0x390] sm:$0xff] }
 0x144   : > { %3126 = vmatprep.subr.bf16.mxu0 %v3125_v40  ;;  %v2700_v40 = vld [vmem:[%s5290_s5 + $0x3a8] sm:$0xff]  ;;  %v3151_v43 = vpack.c.bf16 %v2697_v39, %v2695_v38  ;;  %v2733_v38 = vld [vmem:[%s5290_s5 + $0x4b0] sm:$0xff] }
 0x145   : > { %v3153_v44 = vpack.c.bf16 %v2702_v41, %v2700_v40  ;;  %v2736_v39 = vld [vmem:[%s5290_s5 + $0x4c8] sm:$0xff]  ;;  %v2738_v40 = vld [vmem:[%s5290_s5 + $0x4d8] sm:$0xff] }
 0x147   : > { %3128 = vmatpush1.bf16.msra.mxu0 %v3127_v10  ;;  %v2699_v10 = vld [vmem:[%s5290_s5 + $0x3a0] sm:$0xff] }
 0x148   : > { %3130 = vmatprep.subr.bf16.mxu0 %v3129_v45  ;;  %v2701_v45 = vld [vmem:[%s5290_s5 + $0x3b0] sm:$0xff] }
 0x149   : > { %v3155_v48 = vpack.c.bf16 %v2701_v45, %v2699_v10  ;;  %v2740_v10 = vld [vmem:[%s5290_s5 + $0x4e8] sm:$0xff]  ;;  %v2742_v45 = vld [vmem:[%s5290_s5 + $0x4f8] sm:$0xff] }
 0x14a   : > { %v3193_v47 = vpack.c.bf16 %v2742_v45, %v2740_v10 }
 0x14b   : > { %3132 = vmatpush1.bf16.msra.mxu0 %v3131_v51  ;;  %v2705_v51 = vld [vmem:[%s5290_s5 + $0x3d0] sm:$0xff] }
 0x14c   : > { %3134 = vmatprep.subr.bf16.mxu0 %v3133_v59  ;;  %v3159_v54 = vpack.c.bf16 %v2705_v51, %v2703_v50  ;;  %v2714_v59 = vld [vmem:[%s5290_s5 + $0x418] sm:$0xff]  ;;  %v2744_v50 = vld [vmem:[%s5290_s5 + $0x508] sm:$0xff] }
 0x14d   : > { %v3165_v61 = vpack.c.bf16 %v2714_v59, %v2712_v58  ;;  %v2746_v51 = vld [vmem:[%s5290_s5 + $0x518] sm:$0xff]  ;;  %v3201_v59 = vpack.c.bf16 %v2750_v57, %v2748_v56  ;;  %v2793_v56 = vld [vmem:[%s5292_s7 + $0x1f0] sm:$0xff] }
 0x14e   : > { %v3197_v53 = vpack.c.bf16 %v2746_v51, %v2744_v50  ;;  %v2789_v51 = vld [vmem:[%s5292_s7 + $0x1d0] sm:$0xff]  ;;  %v2794_v57 = vld [vmem:[%s5292_s7 + $0x1f8] sm:$0xff] }
 0x14f   : > { %3136 = vmatpush1.bf16.msra.mxu0 %v3135_v63  ;;  %v2713_v63 = vld [vmem:[%s5290_s5 + $0x410] sm:$0xff] }
 0x1ed   : > { %v977_v8 = vpop.f32.mrb[4].mxu0 }
 0x1ee   : > { %v1004_v9 = vadd.f32 %v997_v5, %v977_v8  ;;  %v979_v11 = vpop.f32.mrb[5].mxu0  ;;  %v2715_v8 = vld [vmem:[%s5290_s5 + $0x420] sm:$0xff] }
 0x1ef   : > { %v1005_v12 = vadd.f32 %v1001_v6, %v979_v11  ;;  %v2720_v11 = vld [vmem:[%s5290_s5 + $0x448] sm:$0xff] }
 0x1f0   : > { %v4264_v15 = vmax.f32 %v1004_v9, 0.0  ;;  %v2717_v9 = vld [vmem:[%s5290_s5 + $0x430] sm:$0xff] }
 0x1f1   : > { %v1009_v13 = vmax.f32 %v1005_v12, 0.0  ;;  %v983_v14 = vpop.f32.mrb[6].mxu0  ;;  %v2722_v12 = vld [vmem:[%s5290_s5 + $0x458] sm:$0xff] }
 0x1f2   : > { %v1006_v16 = vadd.f32 %v997_v5, %v983_v14  ;;  %v985_v17 = vpop.f32.mrb[7].mxu0  ;;  %v3167_v5 = vpack.c.bf16 %v2713_v63, %v2711_v62  ;;  %v3173_v14 = vpack.c.bf16 %v2722_v12, %v2720_v11  ;;  %v2757_v63 = vld [vmem:[%s5292_s7 + $0xe0] sm:$0xff]  ;;  %v2763_v11 = vld [vmem:[%s5292_s7 + $0x110] sm:$0xff]  ;;  %v2764_v12 = vld [vmem:[%s5292_s7 + $0x118] sm:$0xff] }
 0x1f3   : > { %v1007_v18 = vadd.f32 %v1001_v6, %v985_v17  ;;  %2628 = vmatprep.mubr.msk.f32.mxu1 %vm1068_vm4, %v1009_v13  ;;  %2686 = vmatprep.mubr.msk.f32.mxu0 %vm1068_vm4, %v1009_v13  ;;  %v3169_v6 = vpack.c.bf16 %v2718_v3, %v2716_v0  ;;  %v2721_v17 = vld [vmem:[%s5290_s5 + $0x450] sm:$0xff]  ;;  %v2758_v0 = vld [vmem:[%s5292_s7 + $0xe8] sm:$0xff]  ;;  %v3642_v3 = vmov 0.0|0.0  }
 0x1f4   : > { %1140 = vmatmul.mubr.f32.vlgmr.msra.gmra.mrb[20].mxu1 %v4264_v15  ;;  %1275 = vmatmul.mubr.f32.vlgmr.msra.gmra.mrb[8].mxu0 %v4264_v15  ;;  %v4272_v20 = vmax.f32 %v1006_v16, 0.0  ;;  %v2719_v16 = vld [vmem:[%s5290_s5 + $0x440] sm:$0xff] }
 0x1f5   : > { %v4270_v19 = vmax.f32 %v1007_v18, 0.0  ;;  %v2724_v18 = vld [vmem:[%s5290_s5 + $0x468] sm:$0xff]  ;;  %3211 = vmatprep.subr.bf16.mxu0 %v3642_v3 }
 0x1f7   : > { %2629 = vmatprep.mubr.msk.f32.mxu1 %vm1068_vm4, %v4270_v19  ;;  %2687 = vmatprep.mubr.msk.f32.mxu0 %vm1068_vm4, %v4270_v19 }
 0x1f8   : > { %1146 = vmatmul.mubr.f32.gmra.mrb[22].mxu1 %v4272_v20  ;;  %1281 = vmatmul.mubr.f32.gmra.mrb[10].mxu0 %v4272_v20 }
 0x1f9   : > { %1364 = vmatprep.mubr.f32.mxu1 %v3640_v7 }
 0x2c7   : > { %v1141_v21 = vpop.f32.mrb[20].mxu1  ;;  %v1276_v22 = vpop.f32.mrb[8].mxu0 }
 0x2c8   : > { %v1143_v23 = vpop.f32.mrb[21].mxu1  ;;  %v1278_v24 = vpop.f32.mrb[9].mxu0 }
 0x2cb   : > { %v1147_v25 = vpop.f32.mrb[22].mxu1  ;;  %v1282_v26 = vpop.f32.mrb[10].mxu0 }
 0x2cc   : > { %v3146_v27 = vpack.c.bf16 %v1147_v25, %v1141_v21  ;;  %v3140_v28 = vpack.c.bf16 %v1282_v26, %v1276_v22  ;;  %v1149_v29 = vpop.f32.mrb[23].mxu1  ;;  %v1284_v30 = vpop.f32.mrb[11].mxu0  ;;  %v2726_v21 = vld [vmem:[%s5290_s5 + $0x478] sm:$0xff]  ;;  %v3175_v22 = vpack.c.bf16 %v2721_v17, %v2719_v16  ;;  %v2725_v25 = vld [vmem:[%s5290_s5 + $0x470] sm:$0xff]  ;;  %v2728_v26 = vld [vmem:[%s5290_s5 + $0x488] sm:$0xff] }
 0x2cd   : > { %v3143_v32 = vpack.c.bf16 %v1149_v29, %v1143_v23  ;;  %v3137_v33 = vpack.c.bf16 %v1284_v30, %v1278_v24  ;;  %v3177_v23 = vpack.c.bf16 %v2726_v21, %v2724_v18  ;;  %v2723_v24 = vld [vmem:[%s5290_s5 + $0x460] sm:$0xff]  ;;  %v2766_v16 = vld [vmem:[%s5292_s7 + $0x128] sm:$0xff]  ;;  %v2767_v18 = vld [vmem:[%s5292_s7 + $0x130] sm:$0xff] }
 0x2ce   : > { %v2727_v30 = vld [vmem:[%s5290_s5 + $0x480] sm:$0xff]  ;;  %v2768_v21 = vld [vmem:[%s5292_s7 + $0x138] sm:$0xff] }
 0x2cf   : > { %3139 = vmatprep.subr.msk.bf16.mxu1 %vm4282_vm6, %v3137_v33  ;;  %v2732_v33 = vld [vmem:[%s5290_s5 + $0x4a8] sm:$0xff] }
 0x2d0   : > { %3142 = vmatpush1.bf16.msk.msra.mxu1 %vm4282_vm6, %v3140_v28  ;;  %v3179_v28 = vpack.c.bf16 %v2725_v25, %v2723_v24  ;;  %v2770_v24 = vld [vmem:[%s5292_s7 + $0x148] sm:$0xff] }
 0x2d1   : > { %3145 = vmatprep.subr.msk.bf16.mxu1 %vm4282_vm6, %v3143_v32  ;;  %v2729_v32 = vld [vmem:[%s5290_s5 + $0x490] sm:$0xff] }
 0x2d2   : > { %v3183_v35 = vpack.c.bf16 %v2729_v32, %v2727_v30  ;;  %v2774_v30 = vld [vmem:[%s5292_s7 + $0x168] sm:$0xff] }
 0x2d3   : > { %2691 = vmatmul.mubr.msk.f32.vlgmr.msra.gmra.mrb[24].mxu1 %vm1289_vm7, %v2688_v36  ;;  %v3185_v36 = vpack.c.bf16 %v2734_v34, %v2732_v33  ;;  %v2775_v33 = vld [vmem:[%s5292_s7 + $0x170] sm:$0xff]  ;;  %v2776_v34 = vld [vmem:[%s5292_s7 + $0x178] sm:$0xff] }
 0x2d4   : > { %3148 = vmatpush1.bf16.msk.msra.mxu1 %vm4282_vm6, %v3146_v27  ;;  %1444 = vmatprep.mubr.f32.mxu1 %v3640_v7  ;;  %v2730_v27 = vld [vmem:[%s5290_s5 + $0x498] sm:$0xff] }
 0x2d5   : > { %3150 = vmatprep.subr.bf16.mxu1 %v3149_v37  ;;  %v3181_v29 = vpack.c.bf16 %v2730_v27, %v2728_v26  ;;  %v2731_v37 = vld [vmem:[%s5290_s5 + $0x4a0] sm:$0xff]  ;;  %v2771_v26 = vld [vmem:[%s5292_s7 + $0x150] sm:$0xff]  ;;  %v2772_v27 = vld [vmem:[%s5292_s7 + $0x158] sm:$0xff] }
 0x2d6   : > { %v3187_v41 = vpack.c.bf16 %v2733_v38, %v2731_v37  ;;  %v2778_v37 = vld [vmem:[%s5292_s7 + $0x188] sm:$0xff] }
 0x2db   : > { %2694 = vmatmul.mubr.msk.f32.vlgmr.msra.gmra.mrb[24].mxu1 %vm1289_vm7, %v1152_v42  ;;  %v3189_v42 = vpack.c.bf16 %v2738_v40, %v2736_v39  ;;  %v2779_v39 = vld [vmem:[%s5292_s7 + $0x190] sm:$0xff]  ;;  %v2780_v40 = vld [vmem:[%s5292_s7 + $0x198] sm:$0xff] }
 0x2dc   : > { %3152 = vmatpush1.bf16.msra.mxu1 %v3151_v43  ;;  %2751 = vmatprep.mubr.msk.f32.mxu1 %vm1068_vm4, %v1009_v13  ;;  %v3171_v13 = vpack.c.bf16 %v2717_v9, %v2715_v8  ;;  %v2735_v43 = vld [vmem:[%s5290_s5 + $0x4c0] sm:$0xff]  ;;  %v2762_v8 = vld [vmem:[%s5292_s7 + $0x108] sm:$0xff] }
 0x2dd   : > { %3154 = vmatprep.subr.bf16.mxu1 %v3153_v44  ;;  %v2737_v44 = vld [vmem:[%s5290_s5 + $0x4d0] sm:$0xff] }
 0x2de   : > { %v3191_v46 = vpack.c.bf16 %v2737_v44, %v2735_v43 }
 0x2e0   : > { %3156 = vmatpush1.bf16.msra.mxu1 %v3155_v48  ;;  %v2739_v48 = vld [vmem:[%s5290_s5 + $0x4e0] sm:$0xff] }
 0x2e1   : > { %3158 = vmatprep.subr.bf16.mxu1 %v3157_v49  ;;  %v2741_v49 = vld [vmem:[%s5290_s5 + $0x4f0] sm:$0xff] }
 0x2e2   : > { %v3195_v52 = vpack.c.bf16 %v2741_v49, %v2739_v48  ;;  %v2788_v48 = vld [vmem:[%s5292_s7 + $0x1c8] sm:$0xff]  ;;  %v2753_v49 = vld [vmem:[%s5289_s4 + $0x10] sm:$0x7f] }
 0x2e4   : > { %3160 = vmatpush1.bf16.msra.mxu1 %v3159_v54  ;;  %v2743_v54 = vld [vmem:[%s5290_s5 + $0x500] sm:$0xff] }
 0x2e5   : > { %3162 = vmatprep.subr.bf16.mxu1 %v3161_v55  ;;  %v2745_v55 = vld [vmem:[%s5290_s5 + $0x510] sm:$0xff] }
 0x2e6   : > { %v3199_v58 = vpack.c.bf16 %v2745_v55, %v2743_v54  ;;  %v2792_v54 = vld [vmem:[%s5292_s7 + $0x1e8] sm:$0xff] }
 0x2e8   : > { %3164 = vmatpush1.bf16.msra.mxu1 %v3163_v60  ;;  %v2747_v60 = vld [vmem:[%s5290_s5 + $0x520] sm:$0xff] }
 0x2e9   : > { %3166 = vmatprep.subr.bf16.mxu1 %v3165_v61  ;;  %v2749_v61 = vld [vmem:[%s5290_s5 + $0x530] sm:$0xff] }
 0x2ea   : > { %v3203_v62 = vpack.c.bf16 %v2749_v61, %v2747_v60  ;;  %v2796_v60 = vld [vmem:[%s5292_s7 + $0x208] sm:$0xff] }
 0x2ec   : > { %3168 = vmatpush1.bf16.msra.mxu1 %v3167_v5  ;;  %v3212_v5 = vpack.c.bf16 %v2758_v0, %v2757_v63  ;;  %v2798_v63 = vld [vmem:[%s5292_s7 + $0x218] sm:$0xff] }
 0x2ed   : > { %3170 = vmatprep.subr.bf16.mxu1 %v3169_v6  ;;  %v2761_v6 = vld [vmem:[%s5292_s7 + $0x100] sm:$0xff] }
 0x2ee   : > { %3213 = vmatpush1.bf16.msra.mxu0 %v3212_v5  ;;  %v3218_v9 = vpack.c.bf16 %v2762_v8, %v2761_v6  ;;  %v2799_v5 = vld [vmem:[%s5292_s7 + $0x220] sm:$0xff]  ;;  %v2802_v6 = vld [vmem:[%s5292_s7 + $0x238] sm:$0xff] }
 0x2ef   : > { %3214 = vmatprep.subr.bf16.mxu0 %v3642_v3 }
 0x2f0   : > { %3172 = vmatpush1.bf16.msra.mxu1 %v3171_v13  ;;  %v3221_v13 = vpack.c.bf16 %v2764_v12, %v2763_v11  ;;  %v2804_v11 = vld [vmem:[%s5292_s7 + $0x248] sm:$0xff] }
 0x2f1   : > { %3174 = vmatprep.subr.bf16.mxu1 %v3173_v14  ;;  %v2765_v14 = vld [vmem:[%s5292_s7 + $0x120] sm:$0xff] }
 0x2f2   : > { %v3224_v17 = vpack.c.bf16 %v2766_v16, %v2765_v14  ;;  %v2806_v14 = vld [vmem:[%s5292_s7 + $0x258] sm:$0xff] }
 0x2f4   : > { %3176 = vmatpush1.bf16.msra.mxu1 %v3175_v22  ;;  %v3227_v22 = vpack.c.bf16 %v2768_v21, %v2767_v18  ;;  %v2808_v18 = vld [vmem:[%s5292_s7 + $0x268] sm:$0xff] }
 0x2f5   : > { %3178 = vmatprep.subr.bf16.mxu1 %v3177_v23  ;;  %v2769_v23 = vld [vmem:[%s5292_s7 + $0x140] sm:$0xff] }
 0x2f6   : > { %v3230_v25 = vpack.c.bf16 %v2770_v24, %v2769_v23  ;;  %v2810_v23 = vld [vmem:[%s5292_s7 + $0x278] sm:$0xff] }
 0x2f8   : > { %3180 = vmatpush1.bf16.msra.mxu1 %v3179_v28  ;;  %v3233_v28 = vpack.c.bf16 %v2772_v27, %v2771_v26  ;;  %v2782_v26 = vld [vmem:[%s5292_s7 + $0x1a8] sm:$0xff] }
 0x2f9   : > { %3182 = vmatprep.subr.bf16.mxu1 %v3181_v29  ;;  %v2773_v29 = vld [vmem:[%s5292_s7 + $0x160] sm:$0xff] }
 0x2fa   : > { %v3236_v32 = vpack.c.bf16 %v2774_v30, %v2773_v29  ;;  %v2812_v29 = vld [vmem:[%s5292_s7 + $0x288] sm:$0xff] }
 0x2fc   : > { %3184 = vmatpush1.bf16.msra.mxu1 %v3183_v35  ;;  %v3239_v35 = vpack.c.bf16 %v2776_v34, %v2775_v33  ;;  %v2784_v33 = vld [vmem:[%s5292_s7 + $0x1b8] sm:$0xff]  ;;  %v2813_v34 = vld [vmem:[%s5292_s7 + $0x290] sm:$0xff] }
 0x2fd   : > { %3186 = vmatprep.subr.bf16.mxu1 %v3185_v36  ;;  %v2777_v36 = vld [vmem:[%s5292_s7 + $0x180] sm:$0xff] }
 0x2fe   : > { %v3242_v38 = vpack.c.bf16 %v2778_v37, %v2777_v36  ;;  %v2814_v36 = vld [vmem:[%s5292_s7 + $0x298] sm:$0xff] }
 0x2ff   : > { %v3335_v37 = vpack.c.bf16 %v2814_v36, %v2813_v34  ;;  %v2859_v34 = vld [vmem:[%s5292_s7 + $0x3f0] sm:$0xff] }
 0x300   : > { %3188 = vmatpush1.bf16.msra.mxu1 %v3187_v41  ;;  %v3245_v41 = vpack.c.bf16 %v2780_v40, %v2779_v39 }
 0x301   : > { %3190 = vmatprep.subr.bf16.mxu1 %v3189_v42 }
 0x304   : > { %3192 = vmatpush1.bf16.msra.mxu1 %v3191_v46 }
 0x305   : > { %3194 = vmatprep.subr.bf16.mxu1 %v3193_v47  ;;  %v2787_v47 = vld [vmem:[%s5292_s7 + $0x1c0] sm:$0xff] }
 0x306   : > { %v3296_v50 = vpack.c.bf16 %v2788_v48, %v2787_v47 }
 0x308   : > { %3196 = vmatpush1.bf16.msra.mxu1 %v3195_v52  ;;  %v2790_v52 = vld [vmem:[%s5292_s7 + $0x1d8] sm:$0xff] }
 0x309   : > { %3198 = vmatprep.subr.bf16.mxu1 %v3197_v53  ;;  %v3299_v31 = vpack.c.bf16 %v2790_v52, %v2789_v51  ;;  %v2791_v53 = vld [vmem:[%s5292_s7 + $0x1e0] sm:$0xff]  ;;  %v1687_v51 = vld [vmem:[%s5292_s7 + $0x10] sm:$0xff] }
 0x30a   : > { %v3302_v55 = vpack.c.bf16 %v2792_v54, %v2791_v53  ;;  %v1688_v53 = vld [vmem:[%s5292_s7 + $0x18] sm:$0xff]  ;;  %v2847_v54 = vld [vmem:[%s5292_s7 + $0x390] sm:$0xff] }
 0x30c   : > { %3200 = vmatpush1.bf16.msra.mxu1 %v3199_v58  ;;  %v3305_v58 = vpack.c.bf16 %v2794_v57, %v2793_v56  ;;  %v3257_v57 = vpack.c.bf16 %v1688_v53, %v1687_v51  ;;  %v2866_v51 = vld [vmem:[%s5292_s7 + $0x428] sm:$0xff]  ;;  %v1707_v53 = vld [vmem:[%s5292_s7 + $0xb0] sm:$0xff] }
 0x30d   : > { %3202 = vmatprep.subr.bf16.mxu1 %v3201_v59  ;;  %v2795_v59 = vld [vmem:[%s5292_s7 + $0x200] sm:$0xff] }
 0x30e   : > { %v3308_v61 = vpack.c.bf16 %v2796_v60, %v2795_v59  ;;  %v1689_v59 = vld [vmem:[%s5292_s7 + $0x20] sm:$0xff]  ;;  %v1690_v60 = vld [vmem:[%s5292_s7 + $0x28] sm:$0xff] }
 0x310   : > { %3204 = vmatpush1.bf16.msra.mxu1 %v3203_v62  ;;  %v2797_v62 = vld [vmem:[%s5292_s7 + $0x210] sm:$0xff] }
 0x311   : > { %v3311_v0 = vpack.c.bf16 %v2798_v63, %v2797_v62  ;;  %v2850_v62 = vld [vmem:[%s5292_s7 + $0x3a8] sm:$0xff]  ;;  %v3260_v63 = vpack.c.bf16 %v1690_v60, %v1689_v59  ;;  %v1709_v59 = vld [vmem:[%s5292_s7 + $0xc0] sm:$0xff] }
 0x312   : > { %v1710_v60 = vld [vmem:[%s5292_s7 + $0xc8] sm:$0xff] }
 0x313   : > { %1573 = vmatmul.mubr.f32.vlgmr.msra.gmra.mrb[26].mxu1 %v4264_v15  ;;  %v2759_v15 = vld [vmem:[%s5292_s7 + $0xf0] sm:$0xff] }
 0x314   : > { %2752 = vmatprep.mubr.msk.f32.mxu1 %vm1068_vm4, %v4270_v19  ;;  %v2760_v19 = vld [vmem:[%s5292_s7 + $0xf8] sm:$0xff] }
 0x317   : > { %1579 = vmatmul.mubr.f32.gmra.mrb[28].mxu1 %v4272_v20  ;;  %v3215_v20 = vpack.c.bf16 %v2760_v19, %v2759_v15  ;;  %v2800_v15 = vld [vmem:[%s5292_s7 + $0x228] sm:$0xff] }
 0x318   : > { %1660 = vmatprep.mubr.f32.mxu1 %v3640_v7  ;;  %v3314_v19 = vpack.c.bf16 %v2800_v15, %v2799_v5  ;;  %v1691_v5 = vld [vmem:[%s5292_s7 + $0x30] sm:$0xff]  ;;  %v1692_v15 = vld [vmem:[%s5292_s7 + $0x38] sm:$0xff] }
 0x319   : > { %3216 = vmatpush1.bf16.msra.mxu0 %v3215_v20  ;;  %v2801_v20 = vld [vmem:[%s5292_s7 + $0x230] sm:$0xff] }
 0x31a   : > { %3217 = vmatprep.subr.bf16.mxu0 %v3642_v3  ;;  %v3317_v8 = vpack.c.bf16 %v2802_v6, %v2801_v20  ;;  %v2852_v20 = vld [vmem:[%s5292_s7 + $0x3b8] sm:$0xff]  ;;  %v3263_v6 = vpack.c.bf16 %v1692_v15, %v1691_v5  ;;  %v1711_v5 = vld [vmem:[%s5292_s7 + $0xd0] sm:$0xff] }
 0x31b   : > { %v1712_v15 = vld [vmem:[%s5292_s7 + $0xd8] sm:$0xff] }
 0x31d   : > { %3219 = vmatpush1.bf16.msra.mxu0 %v3218_v9  ;;  %v2803_v9 = vld [vmem:[%s5292_s7 + $0x240] sm:$0xff] }
 0x31e   : > { %3220 = vmatprep.subr.bf16.mxu0 %v3642_v3  ;;  %v3320_v12 = vpack.c.bf16 %v2804_v11, %v2803_v9  ;;  %v1693_v9 = vld [vmem:[%s5292_s7 + $0x40] sm:$0xff]  ;;  %v1694_v11 = vld [vmem:[%s5292_s7 + $0x48] sm:$0xff] }
 0x321   : > { %3222 = vmatpush1.bf16.msra.mxu0 %v3221_v13  ;;  %v2805_v13 = vld [vmem:[%s5292_s7 + $0x250] sm:$0xff] }
 0x322   : > { %3223 = vmatprep.subr.bf16.mxu0 %v3642_v3  ;;  %v3323_v16 = vpack.c.bf16 %v2806_v14, %v2805_v13  ;;  %v2854_v13 = vld [vmem:[%s5292_s7 + $0x3c8] sm:$0xff]  ;;  %v3266_v14 = vpack.c.bf16 %v1694_v11, %v1693_v9  ;;  %v2816_v9 = vld [vmem:[%s5292_s7 + $0x2a0] sm:$0xff] }
 0x323   : > { %v2817_v11 = vld [vmem:[%s5292_s7 + $0x2a8] sm:$0xff] }
 0x325   : > { %3225 = vmatpush1.bf16.msra.mxu0 %v3224_v17  ;;  %v2807_v17 = vld [vmem:[%s5292_s7 + $0x260] sm:$0xff] }
 0x326   : > { %3226 = vmatprep.subr.bf16.mxu0 %v3642_v3  ;;  %v3326_v21 = vpack.c.bf16 %v2808_v18, %v2807_v17  ;;  %v1695_v17 = vld [vmem:[%s5292_s7 + $0x50] sm:$0xff]  ;;  %v1696_v18 = vld [vmem:[%s5292_s7 + $0x58] sm:$0xff] }
 0x329   : > { %3228 = vmatpush1.bf16.msra.mxu0 %v3227_v22  ;;  %v2809_v22 = vld [vmem:[%s5292_s7 + $0x270] sm:$0xff] }
 0x32a   : > { %3229 = vmatprep.subr.bf16.mxu0 %v3642_v3  ;;  %v3329_v24 = vpack.c.bf16 %v2810_v23, %v2809_v22  ;;  %v2856_v22 = vld [vmem:[%s5292_s7 + $0x3d8] sm:$0xff]  ;;  %v3269_v23 = vpack.c.bf16 %v1696_v18, %v1695_v17  ;;  %v2818_v18 = vld [vmem:[%s5292_s7 + $0x2b0] sm:$0xff] }
 0x32d   : > { %3231 = vmatpush1.bf16.msra.mxu0 %v3230_v25  ;;  %v2781_v25 = vld [vmem:[%s5292_s7 + $0x1a0] sm:$0xff] }
 0x32e   : > { %3232 = vmatprep.subr.bf16.mxu0 %v3642_v3  ;;  %v3248_v27 = vpack.c.bf16 %v2782_v26, %v2781_v25  ;;  %v1697_v25 = vld [vmem:[%s5292_s7 + $0x60] sm:$0xff]  ;;  %v1698_v26 = vld [vmem:[%s5292_s7 + $0x68] sm:$0xff] }
 0x331   : > { %3234 = vmatpush1.bf16.msra.mxu0 %v3233_v28  ;;  %v2811_v28 = vld [vmem:[%s5292_s7 + $0x280] sm:$0xff] }
 0x332   : > { %3235 = vmatprep.subr.bf16.mxu0 %v3642_v3  ;;  %v3332_v30 = vpack.c.bf16 %v2812_v29, %v2811_v28  ;;  %v2858_v28 = vld [vmem:[%s5292_s7 + $0x3e8] sm:$0xff]  ;;  %v3272_v29 = vpack.c.bf16 %v1698_v26, %v1697_v25 }
 0x335   : > { %3237 = vmatpush1.bf16.msra.mxu0 %v3236_v32  ;;  %v2783_v32 = vld [vmem:[%s5292_s7 + $0x1b0] sm:$0xff] }
 0x336   : > { %3238 = vmatprep.subr.bf16.mxu0 %v3642_v3 }
 0x339   : > { %3240 = vmatpush1.bf16.msra.mxu0 %v3239_v35  ;;  %v3251_v35 = vpack.c.bf16 %v2784_v33, %v2783_v32  ;;  %v1699_v32 = vld [vmem:[%s5292_s7 + $0x70] sm:$0xff]  ;;  %v1700_v33 = vld [vmem:[%s5292_s7 + $0x78] sm:$0xff] }
 0x33a   : > { %3241 = vmatprep.subr.bf16.mxu0 %v3642_v3  ;;  %v3275_v36 = vpack.c.bf16 %v1700_v33, %v1699_v32  ;;  %v2908_v32 = vld [vmem:[%s5292_s7 + $0x568] sm:$0xff] }
 0x33d   : > { %3243 = vmatpush1.bf16.msra.mxu0 %v3242_v38  ;;  %v1669_v38 = vld [vmem:[%s5291_s6] sm:$0x3] }
 0x33e   : > { %3244 = vmatprep.subr.bf16.mxu0 %v3642_v3  ;;  %v1674_v39 = vrot.slane %v1669_v38, %v996_v2  ;;  %v1678_v40 = vrot.slane %v1669_v38, %v1000_v4  ;;  %v2845_v2 = vld [vmem:[%s5292_s7 + $0x380] sm:$0xff] }
 0x33f   : > { %v1701_v38 = vld [vmem:[%s5292_s7 + $0x80] sm:$0xff] }
 0x341   : > { %3246 = vmatpush1.bf16.msra.mxu0 %v3245_v41 }
 0x342   : > { %3247 = vmatprep.subr.bf16.mxu0 %v3642_v3 }
 0x345   : > { %3249 = vmatpush1.bf16.msra.mxu0 %v3248_v27  ;;  %v2857_v27 = vld [vmem:[%s5292_s7 + $0x3e0] sm:$0xff] }
 0x346   : > { %3250 = vmatprep.subr.bf16.mxu0 %v3642_v3 }
 0x349   : > { %3252 = vmatpush1.bf16.msra.mxu0 %v3251_v35  ;;  %v2860_v35 = vld [vmem:[%s5292_s7 + $0x3f8] sm:$0xff] }
 0x34a   : > { %3253 = vmatprep.subr.bf16.mxu0 %v3642_v3 }
 0x3e6   : > { %v1574_v42 = vpop.f32.mrb[26].mxu1 }
 0x3e7   : > { %v1576_v43 = vpop.f32.mrb[27].mxu1 }
 0x3ea   : > { %v1580_v44 = vpop.f32.mrb[28].mxu1 }
 0x3eb   : > { %v3208_v10 = vpack.c.bf16 %v1580_v44, %v1574_v42  ;;  %v1582_v45 = vpop.f32.mrb[29].mxu1 }
 0x3ec   : > { %v3205_v46 = vpack.c.bf16 %v1582_v45, %v1576_v43 }
 0x3ee   : > { %3207 = vmatprep.subr.msk.bf16.mxu1 %vm4282_vm6, %v3205_v46  ;;  %v1686_v46 = vld [vmem:[%s5292_s7 + $0x8] sm:$0xff] }
 0x3ef   : > { %3210 = vmatpush1.bf16.msk.msra.mxu1 %vm4282_vm6, %v3208_v10  ;;  %v1685_v10 = vld [vmem:[%s5292_s7] sm:$0xff] }
 0x3f0   : > { %3295 = vmatprep.subr.bf16.mxu1 %v3642_v3 }
 0x3f2   : > { %2756 = vmatmul.mubr.msk.f32.vlgmr.msra.gmra.mrb[24].mxu1 %vm1289_vm7, %v2753_v49  ;;  %v3254_v49 = vpack.c.bf16 %v1686_v46, %v1685_v10  ;;  %v1704_v10 = vld [vmem:[%s5292_s7 + $0x98] sm:$0xff]  ;;  %v2863_v46 = vld [vmem:[%s5292_s7 + $0x410] sm:$0xff] }
 0x3f3   : > { %3297 = vmatpush1.bf16.msra.mxu1 %v3296_v50  ;;  %v3380_v50 = vpack.c.bf16 %v2846_v1, %v2845_v2  ;;  %v2864_v2 = vld [vmem:[%s5292_s7 + $0x418] sm:$0xff] }
 0x3f4   : > { %3298 = vmatprep.subr.bf16.mxu1 %v3642_v3 }
 0x3f7   : > { %3300 = vmatpush1.bf16.msra.mxu1 %v3299_v31 }
 0x3f8   : > { %3301 = vmatprep.subr.bf16.mxu1 %v3642_v3 }
 0x3fb   : > { %3303 = vmatpush1.bf16.msra.mxu1 %v3302_v55  ;;  %v2848_v55 = vld [vmem:[%s5292_s7 + $0x398] sm:$0xff] }
 0x3fc   : > { %3304 = vmatprep.subr.bf16.mxu1 %v3642_v3 }
 0x3ff   : > { %3306 = vmatpush1.bf16.msra.mxu1 %v3305_v58  ;;  %v3383_v58 = vpack.c.bf16 %v2848_v55, %v2847_v54  ;;  %v1708_v54 = vld [vmem:[%s5292_s7 + $0xb8] sm:$0xff]  ;;  %v2867_v55 = vld [vmem:[%s5292_s7 + $0x430] sm:$0xff] }
 0x400   : > { %3307 = vmatprep.subr.bf16.mxu1 %v3642_v3 }
 0x403   : > { %3309 = vmatpush1.bf16.msra.mxu1 %v3308_v61  ;;  %v2849_v61 = vld [vmem:[%s5292_s7 + $0x3a0] sm:$0xff] }
 0x404   : > { %3310 = vmatprep.subr.bf16.mxu1 %v3642_v3 }
 0x407   : > { %3312 = vmatpush1.bf16.msra.mxu1 %v3311_v0  ;;  %v3386_v0 = vpack.c.bf16 %v2850_v62, %v2849_v61  ;;  %v2869_v61 = vld [vmem:[%s5292_s7 + $0x440] sm:$0xff]  ;;  %v2870_v62 = vld [vmem:[%s5292_s7 + $0x448] sm:$0xff] }
 0x408   : > { %3313 = vmatprep.subr.bf16.mxu1 %v3642_v3 }
 0x40b   : > { %3315 = vmatpush1.bf16.msra.mxu1 %v3314_v19  ;;  %v2851_v19 = vld [vmem:[%s5292_s7 + $0x3b0] sm:$0xff] }
 0x40c   : > { %3316 = vmatprep.subr.bf16.mxu1 %v3642_v3 }
 0x40f   : > { %3318 = vmatpush1.bf16.msra.mxu1 %v3317_v8  ;;  %v3389_v8 = vpack.c.bf16 %v2852_v20, %v2851_v19  ;;  %v2871_v19 = vld [vmem:[%s5292_s7 + $0x450] sm:$0xff]  ;;  %v2872_v20 = vld [vmem:[%s5292_s7 + $0x458] sm:$0xff] }
 0x410   : > { %3319 = vmatprep.subr.bf16.mxu1 %v3642_v3 }
 0x413   : > { %3321 = vmatpush1.bf16.msra.mxu1 %v3320_v12  ;;  %v2853_v12 = vld [vmem:[%s5292_s7 + $0x3c0] sm:$0xff] }
 0x414   : > { %3322 = vmatprep.subr.bf16.mxu1 %v3642_v3 }
 0x417   : > { %3324 = vmatpush1.bf16.msra.mxu1 %v3323_v16  ;;  %v3392_v16 = vpack.c.bf16 %v2854_v13, %v2853_v12  ;;  %v2903_v12 = vld [vmem:[%s5292_s7 + $0x540] sm:$0xff]  ;;  %v2904_v13 = vld [vmem:[%s5292_s7 + $0x548] sm:$0xff] }
 0x418   : > { %3325 = vmatprep.subr.bf16.mxu1 %v3642_v3  ;;  %v3464_v17 = vpack.c.bf16 %v2904_v13, %v2903_v12  ;;  %v2836_v13 = vld [vmem:[%s5292_s7 + $0x340] sm:$0xff] }
 0x41b   : > { %3327 = vmatpush1.bf16.msra.mxu1 %v3326_v21  ;;  %v2855_v21 = vld [vmem:[%s5292_s7 + $0x3d0] sm:$0xff] }
 0x41c   : > { %3328 = vmatprep.subr.bf16.mxu1 %v3642_v3 }
 0x41f   : > { %3330 = vmatpush1.bf16.msra.mxu1 %v3329_v24  ;;  %v3395_v24 = vpack.c.bf16 %v2856_v22, %v2855_v21  ;;  %v2819_v21 = vld [vmem:[%s5292_s7 + $0x2b8] sm:$0xff] }
 0x420   : > { %3331 = vmatprep.subr.bf16.mxu1 %v3642_v3  ;;  %v3341_v26 = vpack.c.bf16 %v2819_v21, %v2818_v18 }
 0x423   : > { %3333 = vmatpush1.bf16.msra.mxu1 %v3332_v30  ;;  %v3398_v30 = vpack.c.bf16 %v2858_v28, %v2857_v27  ;;  %v2820_v28 = vld [vmem:[%s5292_s7 + $0x2c0] sm:$0xff] }
 0x424   : > { %3334 = vmatprep.subr.bf16.mxu1 %v3642_v3 }
 0x427   : > { %3336 = vmatpush1.bf16.msra.mxu1 %v3335_v37  ;;  %v3401_v37 = vpack.c.bf16 %v2860_v35, %v2859_v34  ;;  %v2822_v35 = vld [vmem:[%s5292_s7 + $0x2d0] sm:$0xff] }
 0x428   : > { %3379 = vmatprep.subr.bf16.mxu1 %v3642_v3 }
 0x4c5   : > { %v1662_v41 = vpop.f32.mrb[24].mxu1 }
 0x4c6   : > { %v1681_v42 = vadd.f32 %v1674_v39, %v1662_v41  ;;  %v1664_v43 = vpop.f32.mrb[25].mxu1  ;;  %v1702_v39 = vld [vmem:[%s5292_s7 + $0x88] sm:$0xff] }
 0x4c7   : > { %v1682_v44 = vadd.f32 %v1678_v40, %v1664_v43  ;;  %v2861_v40 = vld [vmem:[%s5292_s7 + $0x400] sm:$0xff]  ;;  %v2862_v41 = vld [vmem:[%s5292_s7 + $0x408] sm:$0xff] }
 0x4c8   : > { %v4693_v45 = vmax.f32 %v1681_v42, 0.0  ;;  %v3278_v42 = vpack.c.bf16 %v1702_v39, %v1701_v38  ;;  %v3404_v43 = vpack.c.bf16 %v2862_v41, %v2861_v40  ;;  %v2910_v38 = vld [vmem:[%s5292_s7 + $0x578] sm:$0xff]  ;;  %v2824_v41 = vld [vmem:[%s5292_s7 + $0x2e0] sm:$0xff] }
 0x4c9   : > { %v4704_v4 = vmax.f32 %v1682_v44, 0.0  ;;  %v1703_v44 = vld [vmem:[%s5292_s7 + $0x90] sm:$0xff] }
 0x4ca   : > { %v1744_v52 = vrot.slane %v4693_v45, 1  ;;  %v1920_v31 = vrot.slane %v4693_v45, 2  ;;  %v3281_v1 = vpack.c.bf16 %v1704_v10, %v1703_v44  ;;  %v2912_v44 = vld [vmem:[%s5292_s7 + $0x588] sm:$0xff] }
 0x4cb   : > { %v1745_v47 = vrot.slane %v4704_v4, 1  ;;  %v1921_v48 = vrot.slane %v4704_v4, 2  ;;  %v2131_v56 = vrot.slane %v4704_v4, 4  ;;  %v2026_v22 = vrot.slane %v4704_v4, 3 }
 0x4cc   : > { %v2341_v25 = vrot.slane %v4704_v4, 6 }
 0x4cd   : > { %2785 = vmatprep.mubr.msk.f32.mxu0 %vm1068_vm4, %v1745_v47  ;;  %2815 = vmatprep.mubr.msk.f32.mxu1 %vm1068_vm4, %v1921_v48  ;;  %v3407_v47 = vpack.c.bf16 %v2864_v2, %v2863_v46  ;;  %v1705_v48 = vld [vmem:[%s5292_s7 + $0xa0] sm:$0xff]  ;;  %v2826_v2 = vld [vmem:[%s5292_s7 + $0x2f0] sm:$0xff] }
 0x4ce   : > { %1814 = vmatmul.mubr.f32.vlgmr.msra.gmra.mrb[12].mxu0 %v1744_v52  ;;  %1990 = vmatmul.mubr.f32.vlgmr.msra.gmra.mrb[30].mxu1 %v1920_v31 }
 0x4cf   : > { %3255 = vmatpush1.bf16.msra.mxu0 %v3254_v49  ;;  %3381 = vmatpush1.bf16.msra.mxu1 %v3380_v50  ;;  %v1706_v49 = vld [vmem:[%s5292_s7 + $0xa8] sm:$0xff]  ;;  %v2865_v50 = vld [vmem:[%s5292_s7 + $0x420] sm:$0xff] }
 0x4d0   : > { %2786 = vmatprep.mubr.msk.f32.mxu0 %vm1068_vm4, %v4704_v4  ;;  %2873 = vmatprep.mubr.msk.f32.mxu1 %vm1068_vm4, %v2131_v56  ;;  %v3284_v52 = vpack.c.bf16 %v1706_v49, %v1705_v48  ;;  %v3410_v31 = vpack.c.bf16 %v2866_v51, %v2865_v50  ;;  %v2868_v56 = vld [vmem:[%s5292_s7 + $0x438] sm:$0xff]  ;;  %v2828_v51 = vld [vmem:[%s5292_s7 + $0x300] sm:$0xff] }
 0x4d1   : > { %3256 = vmatprep.subr.bf16.mxu0 %v3642_v3  ;;  %3382 = vmatprep.subr.bf16.mxu1 %v3642_v3  ;;  %v2914_v48 = vld [vmem:[%s5292_s7 + $0x598] sm:$0xff] }
 0x4d3   : > { %3258 = vmatpush1.bf16.msra.mxu0 %v3257_v57  ;;  %3384 = vmatpush1.bf16.msra.mxu1 %v3383_v58  ;;  %v3287_v57 = vpack.c.bf16 %v1708_v54, %v1707_v53  ;;  %v3413_v58 = vpack.c.bf16 %v2868_v56, %v2867_v55  ;;  %v2916_v53 = vld [vmem:[%s5292_s7 + $0x5a8] sm:$0xff]  ;;  %v2830_v56 = vld [vmem:[%s5292_s7 + $0x310] sm:$0xff] }
 0x4d4   : > { %3259 = vmatprep.subr.bf16.mxu0 %v3642_v3  ;;  %3385 = vmatprep.subr.bf16.mxu1 %v3642_v3 }
 0x4d7   : > { %3261 = vmatpush1.bf16.msra.mxu0 %v3260_v63  ;;  %3387 = vmatpush1.bf16.msra.mxu1 %v3386_v0  ;;  %v3290_v63 = vpack.c.bf16 %v1710_v60, %v1709_v59  ;;  %v3416_v0 = vpack.c.bf16 %v2870_v62, %v2869_v61  ;;  %v2918_v59 = vld [vmem:[%s5292_s7 + $0x5b8] sm:$0xff]  ;;  %v2832_v62 = vld [vmem:[%s5292_s7 + $0x320] sm:$0xff] }
 0x4d8   : > { %3262 = vmatprep.subr.bf16.mxu0 %v3642_v3  ;;  %3388 = vmatprep.subr.bf16.mxu1 %v3642_v3 }
 0x4db   : > { %3264 = vmatpush1.bf16.msra.mxu0 %v3263_v6  ;;  %3390 = vmatpush1.bf16.msra.mxu1 %v3389_v8  ;;  %v3293_v6 = vpack.c.bf16 %v1712_v15, %v1711_v5  ;;  %v3419_v8 = vpack.c.bf16 %v2872_v20, %v2871_v19  ;;  %v2920_v5 = vld [vmem:[%s5292_s7 + $0x5c8] sm:$0xff]  ;;  %v2834_v20 = vld [vmem:[%s5292_s7 + $0x330] sm:$0xff] }
 0x4dc   : > { %3265 = vmatprep.subr.bf16.mxu0 %v3642_v3  ;;  %3391 = vmatprep.subr.bf16.mxu1 %v3642_v3 }
 0x4df   : > { %3267 = vmatpush1.bf16.msra.mxu0 %v3266_v14  ;;  %3393 = vmatpush1.bf16.msra.mxu1 %v3392_v16  ;;  %v3338_v14 = vpack.c.bf16 %v2817_v11, %v2816_v9  ;;  %v2130_v16 = vrot.slane %v4693_v45, 4  ;;  %v2922_v9 = vld [vmem:[%s5292_s7 + $0x5d8] sm:$0xff] }
 0x4e0   : > { %3268 = vmatprep.subr.bf16.mxu0 %v3642_v3  ;;  %3394 = vmatprep.subr.bf16.mxu1 %v3642_v3 }
 0x4e3   : > { %3270 = vmatpush1.bf16.msra.mxu0 %v3269_v23  ;;  %3396 = vmatpush1.bf16.msra.mxu1 %v3395_v24  ;;  %v2905_v23 = vld [vmem:[%s5292_s7 + $0x550] sm:$0xff]  ;;  %v2906_v24 = vld [vmem:[%s5292_s7 + $0x558] sm:$0xff] }
 0x4e4   : > { %3271 = vmatprep.subr.bf16.mxu0 %v3642_v3  ;;  %3397 = vmatprep.subr.bf16.mxu1 %v3642_v3  ;;  %v3467_v27 = vpack.c.bf16 %v2906_v24, %v2905_v23  ;;  %v2839_v23 = vld [vmem:[%s5292_s7 + $0x358] sm:$0xff]  ;;  %v2925_v24 = vld [vmem:[%s5292_s7 + $0x5f0] sm:$0xff] }
 0x4e7   : > { %3273 = vmatpush1.bf16.msra.mxu0 %v3272_v29  ;;  %3399 = vmatpush1.bf16.msra.mxu1 %v3398_v30  ;;  %v2821_v29 = vld [vmem:[%s5292_s7 + $0x2c8] sm:$0xff]  ;;  %v2907_v30 = vld [vmem:[%s5292_s7 + $0x560] sm:$0xff] }
 0x4e8   : > { %3274 = vmatprep.subr.bf16.mxu0 %v3642_v3  ;;  %3400 = vmatprep.subr.bf16.mxu1 %v3642_v3  ;;  %v3344_v33 = vpack.c.bf16 %v2821_v29, %v2820_v28  ;;  %v3470_v34 = vpack.c.bf16 %v2908_v32, %v2907_v30  ;;  %v2840_v28 = vld [vmem:[%s5292_s7 + $0x360] sm:$0xff]  ;;  %v2841_v29 = vld [vmem:[%s5292_s7 + $0x368] sm:$0xff] }
 0x4e9   : > { %v2927_v30 = vld [vmem:[%s5292_s7 + $0x600] sm:$0xff]  ;;  %v2928_v32 = vld [vmem:[%s5292_s7 + $0x608] sm:$0xff] }
 0x4eb   : > { %3276 = vmatpush1.bf16.msra.mxu0 %v3275_v36  ;;  %3402 = vmatpush1.bf16.msra.mxu1 %v3401_v37  ;;  %v2823_v36 = vld [vmem:[%s5292_s7 + $0x2d8] sm:$0xff]  ;;  %v2909_v37 = vld [vmem:[%s5292_s7 + $0x570] sm:$0xff] }
 0x4ec   : > { %3277 = vmatprep.subr.bf16.mxu0 %v3642_v3  ;;  %3403 = vmatprep.subr.bf16.mxu1 %v3642_v3  ;;  %v3347_v39 = vpack.c.bf16 %v2823_v36, %v2822_v35  ;;  %v3473_v40 = vpack.c.bf16 %v2910_v38, %v2909_v37  ;;  %v2842_v35 = vld [vmem:[%s5292_s7 + $0x370] sm:$0xff]  ;;  %v2843_v36 = vld [vmem:[%s5292_s7 + $0x378] sm:$0xff] }
 0x4ed   : > { %v2929_v37 = vld [vmem:[%s5292_s7 + $0x610] sm:$0xff]  ;;  %v2930_v38 = vld [vmem:[%s5292_s7 + $0x618] sm:$0xff] }
 0x4ef   : > { %3279 = vmatpush1.bf16.msra.mxu0 %v3278_v42  ;;  %3405 = vmatpush1.bf16.msra.mxu1 %v3404_v43  ;;  %v2825_v42 = vld [vmem:[%s5292_s7 + $0x2e8] sm:$0xff]  ;;  %v2911_v43 = vld [vmem:[%s5292_s7 + $0x580] sm:$0xff] }
 0x4f0   : > { %3280 = vmatprep.subr.bf16.mxu0 %v3642_v3  ;;  %3406 = vmatprep.subr.bf16.mxu1 %v3642_v3  ;;  %v3350_v10 = vpack.c.bf16 %v2825_v42, %v2824_v41  ;;  %v3476_v46 = vpack.c.bf16 %v2912_v44, %v2911_v43  ;;  %v2874_v41 = vld [vmem:[%s5292_s7 + $0x460] sm:$0xff]  ;;  %v2875_v42 = vld [vmem:[%s5292_s7 + $0x468] sm:$0xff]  ;;  %v2025_v44 = vrot.slane %v4693_v45, 3 }
 0x4f1   : > { %v3422_v43 = vpack.c.bf16 %v2875_v42, %v2874_v41 }
 0x4f3   : > { %3282 = vmatpush1.bf16.msra.mxu0 %v3281_v1  ;;  %3408 = vmatpush1.bf16.msra.mxu1 %v3407_v47  ;;  %v2827_v1 = vld [vmem:[%s5292_s7 + $0x2f8] sm:$0xff]  ;;  %v2913_v47 = vld [vmem:[%s5292_s7 + $0x590] sm:$0xff] }
 0x4f4   : > { %3283 = vmatprep.subr.bf16.mxu0 %v3642_v3  ;;  %3409 = vmatprep.subr.bf16.mxu1 %v3642_v3  ;;  %v3353_v49 = vpack.c.bf16 %v2827_v1, %v2826_v2  ;;  %v3479_v50 = vpack.c.bf16 %v2914_v48, %v2913_v47  ;;  %v2340_v2 = vrot.slane %v4693_v45, 6  ;;  %v2236_v1 = vrot.slane %v4704_v4, 5  ;;  %v2878_v48 = vld [vmem:[%s5292_s7 + $0x480] sm:$0xff]  ;;  %v2880_v4 = vld [vmem:[%s5292_s7 + $0x490] sm:$0xff] }
 0x4f7   : > { %3285 = vmatpush1.bf16.msra.mxu0 %v3284_v52  ;;  %3411 = vmatpush1.bf16.msra.mxu1 %v3410_v31  ;;  %v2829_v52 = vld [vmem:[%s5292_s7 + $0x308] sm:$0xff]  ;;  %v2915_v31 = vld [vmem:[%s5292_s7 + $0x5a0] sm:$0xff] }
 0x4f8   : > { %3286 = vmatprep.subr.bf16.mxu0 %v3642_v3  ;;  %3412 = vmatprep.subr.bf16.mxu1 %v3642_v3  ;;  %v3356_v54 = vpack.c.bf16 %v2829_v52, %v2828_v51  ;;  %v3482_v55 = vpack.c.bf16 %v2916_v53, %v2915_v31  ;;  %v2881_v51 = vld [vmem:[%s5292_s7 + $0x498] sm:$0xff]  ;;  %v2882_v31 = vld [vmem:[%s5292_s7 + $0x4a0] sm:$0xff]  ;;  %v2883_v53 = vld [vmem:[%s5292_s7 + $0x4a8] sm:$0xff] }
 0x4f9   : > { %v3431_v52 = vpack.c.bf16 %v2881_v51, %v2880_v4 }
 0x4fb   : > { %3288 = vmatpush1.bf16.msra.mxu0 %v3287_v57  ;;  %3414 = vmatpush1.bf16.msra.mxu1 %v3413_v58  ;;  %v2831_v57 = vld [vmem:[%s5292_s7 + $0x318] sm:$0xff]  ;;  %v2917_v58 = vld [vmem:[%s5292_s7 + $0x5b0] sm:$0xff] }
 0x4fc   : > { %3289 = vmatprep.subr.bf16.mxu0 %v3642_v3  ;;  %3415 = vmatprep.subr.bf16.mxu1 %v3642_v3  ;;  %v3359_v60 = vpack.c.bf16 %v2831_v57, %v2830_v56  ;;  %v3485_v61 = vpack.c.bf16 %v2918_v59, %v2917_v58  ;;  %v2885_v56 = vld [vmem:[%s5292_s7 + $0x4b8] sm:$0xff]  ;;  %v2886_v58 = vld [vmem:[%s5292_s7 + $0x4c0] sm:$0xff]  ;;  %v2887_v59 = vld [vmem:[%s5292_s7 + $0x4c8] sm:$0xff] }
 0x4ff   : > { %3291 = vmatpush1.bf16.msra.mxu0 %v3290_v63  ;;  %3417 = vmatpush1.bf16.msra.mxu1 %v3416_v0  ;;  %v2833_v63 = vld [vmem:[%s5292_s7 + $0x328] sm:$0xff]  ;;  %v2919_v0 = vld [vmem:[%s5292_s7 + $0x5c0] sm:$0xff] }
 0x500   : > { %3292 = vmatprep.subr.bf16.mxu0 %v3642_v3  ;;  %3418 = vmatprep.subr.bf16.mxu1 %v3642_v3  ;;  %v3362_v15 = vpack.c.bf16 %v2833_v63, %v2832_v62  ;;  %v3488_v19 = vpack.c.bf16 %v2920_v5, %v2919_v0  ;;  %v2889_v62 = vld [vmem:[%s5292_s7 + $0x4d8] sm:$0xff]  ;;  %v2890_v0 = vld [vmem:[%s5292_s7 + $0x4e0] sm:$0xff]  ;;  %v2891_v5 = vld [vmem:[%s5292_s7 + $0x4e8] sm:$0xff] }
 0x503   : > { %3294 = vmatpush1.bf16.msra.mxu0 %v3293_v6  ;;  %3420 = vmatpush1.bf16.msra.mxu1 %v3419_v8  ;;  %v2835_v6 = vld [vmem:[%s5292_s7 + $0x338] sm:$0xff]  ;;  %v2921_v8 = vld [vmem:[%s5292_s7 + $0x5d0] sm:$0xff] }
 0x504   : > { %3337 = vmatprep.subr.bf16.mxu0 %v3642_v3  ;;  %3463 = vmatprep.subr.bf16.mxu1 %v3642_v3  ;;  %v3365_v11 = vpack.c.bf16 %v2835_v6, %v2834_v20  ;;  %v3491_v12 = vpack.c.bf16 %v2922_v9, %v2921_v8  ;;  %v2893_v20 = vld [vmem:[%s5292_s7 + $0x4f8] sm:$0xff]  ;;  %v2894_v8 = vld [vmem:[%s5292_s7 + $0x500] sm:$0xff]  ;;  %v2895_v9 = vld [vmem:[%s5292_s7 + $0x508] sm:$0xff] }
 0x506   : > { %1886 = vmatmul.mubr.f32.vlgmr.msra.gmra.mrb[14].mxu0 %v4693_v45  ;;  %2200 = vmatmul.mubr.f32.vlgmr.msra.gmra.mrb[32].mxu1 %v2130_v16  ;;  %v2923_v16 = vld [vmem:[%s5292_s7 + $0x5e0] sm:$0xff] }
 0x507   : > { %3339 = vmatpush1.bf16.msra.mxu0 %v3338_v14  ;;  %2844 = vmatprep.mubr.msk.f32.mxu0 %vm1068_vm4, %v2026_v22  ;;  %v2837_v14 = vld [vmem:[%s5292_s7 + $0x348] sm:$0xff]  ;;  %v2838_v22 = vld [vmem:[%s5292_s7 + $0x350] sm:$0xff] }
 0x508   : > { %3465 = vmatpush1.bf16.msra.mxu1 %v3464_v17  ;;  %2931 = vmatprep.mubr.msk.f32.mxu1 %vm1068_vm4, %v2341_v25  ;;  %v2924_v17 = vld [vmem:[%s5292_s7 + $0x5e8] sm:$0xff]  ;;  %v3368_v18 = vpack.c.bf16 %v2837_v14, %v2836_v13  ;;  %v2926_v25 = vld [vmem:[%s5292_s7 + $0x5f8] sm:$0xff] }
 0x509   : > { %3340 = vmatprep.subr.bf16.mxu0 %v3642_v3  ;;  %3466 = vmatprep.subr.bf16.mxu1 %v3642_v3  ;;  %v3494_v21 = vpack.c.bf16 %v2924_v17, %v2923_v16  ;;  %v2897_v13 = vld [vmem:[%s5292_s7 + $0x518] sm:$0xff]  ;;  %v2898_v16 = vld [vmem:[%s5292_s7 + $0x520] sm:$0xff]  ;;  %v2899_v17 = vld [vmem:[%s5292_s7 + $0x528] sm:$0xff] }
 0x50b   : > { %3342 = vmatpush1.bf16.msra.mxu0 %v3341_v26  ;;  %v3371_v26 = vpack.c.bf16 %v2839_v23, %v2838_v22  ;;  %v2901_v22 = vld [vmem:[%s5292_s7 + $0x538] sm:$0xff] }
 0x50c   : > { %3468 = vmatpush1.bf16.msra.mxu1 %v3467_v27  ;;  %3343 = vmatprep.subr.bf16.mxu0 %v3642_v3  ;;  %v3497_v27 = vpack.c.bf16 %v2926_v25, %v2925_v24  ;;  %v2235_v24 = vrot.slane %v4693_v45, 5  ;;  %v2419_v25 = vld [vmem:[%s5294_s9] sm:$0xff]  ;;  %v2422_v45 = vld [vmem:[%s5294_s9 + $0x18] sm:$0xff] }
 0x50d   : > { %3469 = vmatprep.subr.bf16.mxu1 %v3642_v3 }
 0x50f   : > { %3345 = vmatpush1.bf16.msra.mxu0 %v3344_v33  ;;  %v3374_v33 = vpack.c.bf16 %v2841_v29, %v2840_v28 }
 0x510   : > { %3471 = vmatpush1.bf16.msra.mxu1 %v3470_v34  ;;  %3346 = vmatprep.subr.bf16.mxu0 %v3642_v3  ;;  %v3500_v34 = vpack.c.bf16 %v2928_v32, %v2927_v30 }
 0x511   : > { %3472 = vmatprep.subr.bf16.mxu1 %v3642_v3 }
 0x513   : > { %3348 = vmatpush1.bf16.msra.mxu0 %v3347_v39  ;;  %v3377_v39 = vpack.c.bf16 %v2843_v36, %v2842_v35  ;;  %v2423_v35 = vld [vmem:[%s5294_s9 + $0x20] sm:$0xff]  ;;  %v2424_v36 = vld [vmem:[%s5294_s9 + $0x28] sm:$0xff] }
 0x514   : > { %3474 = vmatpush1.bf16.msra.mxu1 %v3473_v40  ;;  %3349 = vmatprep.subr.bf16.mxu0 %v3642_v3  ;;  %v3503_v40 = vpack.c.bf16 %v2930_v38, %v2929_v37  ;;  %v3512_v37 = vpack.c.bf16 %v2424_v36, %v2423_v35  ;;  %v2425_v38 = vld [vmem:[%s5294_s9 + $0x30] sm:$0xff] }
 0x515   : > { %3475 = vmatprep.subr.bf16.mxu1 %v3642_v3 }
 0x517   : > { %3351 = vmatpush1.bf16.msra.mxu0 %v3350_v10  ;;  %v2876_v10 = vld [vmem:[%s5292_s7 + $0x470] sm:$0xff] }
 0x518   : > { %3477 = vmatpush1.bf16.msra.mxu1 %v3476_v46  ;;  %3352 = vmatprep.subr.bf16.mxu0 %v3642_v3  ;;  %v2877_v46 = vld [vmem:[%s5292_s7 + $0x478] sm:$0xff] }
 0x519   : > { %3478 = vmatprep.subr.bf16.mxu1 %v3642_v3  ;;  %v3425_v47 = vpack.c.bf16 %v2877_v46, %v2876_v10 }
 0x51b   : > { %3354 = vmatpush1.bf16.msra.mxu0 %v3353_v49  ;;  %v2879_v49 = vld [vmem:[%s5292_s7 + $0x488] sm:$0xff] }
 0x51c   : > { %3480 = vmatpush1.bf16.msra.mxu1 %v3479_v50  ;;  %3355 = vmatprep.subr.bf16.mxu0 %v3642_v3  ;;  %v3428_v50 = vpack.c.bf16 %v2879_v49, %v2878_v48 }
 0x51d   : > { %3481 = vmatprep.subr.bf16.mxu1 %v3642_v3 }
 0x51f   : > { %3357 = vmatpush1.bf16.msra.mxu0 %v3356_v54  ;;  %v3434_v54 = vpack.c.bf16 %v2883_v53, %v2882_v31 }
 0x520   : > { %3483 = vmatpush1.bf16.msra.mxu1 %v3482_v55  ;;  %3358 = vmatprep.subr.bf16.mxu0 %v3642_v3  ;;  %v2884_v55 = vld [vmem:[%s5292_s7 + $0x4b0] sm:$0xff] }
 0x521   : > { %3484 = vmatprep.subr.bf16.mxu1 %v3642_v3  ;;  %v3437_v57 = vpack.c.bf16 %v2885_v56, %v2884_v55 }
 0x523   : > { %3360 = vmatpush1.bf16.msra.mxu0 %v3359_v60  ;;  %v3440_v60 = vpack.c.bf16 %v2887_v59, %v2886_v58 }
 0x524   : > { %3486 = vmatpush1.bf16.msra.mxu1 %v3485_v61  ;;  %3361 = vmatprep.subr.bf16.mxu0 %v3642_v3  ;;  %v2888_v61 = vld [vmem:[%s5292_s7 + $0x4d0] sm:$0xff] }
 0x525   : > { %3487 = vmatprep.subr.bf16.mxu1 %v3642_v3  ;;  %v3443_v63 = vpack.c.bf16 %v2889_v62, %v2888_v61 }
 0x527   : > { %3363 = vmatpush1.bf16.msra.mxu0 %v3362_v15  ;;  %v3446_v15 = vpack.c.bf16 %v2891_v5, %v2890_v0 }
 0x528   : > { %3489 = vmatpush1.bf16.msra.mxu1 %v3488_v19  ;;  %3364 = vmatprep.subr.bf16.mxu0 %v3642_v3  ;;  %v2892_v19 = vld [vmem:[%s5292_s7 + $0x4f0] sm:$0xff] }
 0x529   : > { %3490 = vmatprep.subr.bf16.mxu1 %v3642_v3  ;;  %v3449_v6 = vpack.c.bf16 %v2893_v20, %v2892_v19 }
 0x52b   : > { %3366 = vmatpush1.bf16.msra.mxu0 %v3365_v11  ;;  %v3452_v11 = vpack.c.bf16 %v2895_v9, %v2894_v8 }
 0x52c   : > { %3492 = vmatpush1.bf16.msra.mxu1 %v3491_v12  ;;  %3367 = vmatprep.subr.bf16.mxu0 %v3642_v3  ;;  %v2896_v12 = vld [vmem:[%s5292_s7 + $0x510] sm:$0xff] }
 0x52d   : > { %3493 = vmatprep.subr.bf16.mxu1 %v3642_v3  ;;  %v3455_v14 = vpack.c.bf16 %v2897_v13, %v2896_v12 }
 0x52f   : > { %3369 = vmatpush1.bf16.msra.mxu0 %v3368_v18  ;;  %v3458_v18 = vpack.c.bf16 %v2899_v17, %v2898_v16 }
 0x530   : > { %3495 = vmatpush1.bf16.msra.mxu1 %v3494_v21  ;;  %3370 = vmatprep.subr.bf16.mxu0 %v3642_v3  ;;  %v2900_v21 = vld [vmem:[%s5292_s7 + $0x530] sm:$0xff] }
 0x531   : > { %3496 = vmatprep.subr.bf16.mxu1 %v3642_v3  ;;  %v3461_v23 = vpack.c.bf16 %v2901_v22, %v2900_v21 }
 0x533   : > { %3372 = vmatpush1.bf16.msra.mxu0 %v3371_v26  ;;  %v2420_v26 = vld [vmem:[%s5294_s9 + $0x8] sm:$0xff] }
 0x534   : > { %3498 = vmatpush1.bf16.msra.mxu1 %v3497_v27  ;;  %3373 = vmatprep.subr.bf16.mxu0 %v3642_v3  ;;  %v2421_v27 = vld [vmem:[%s5294_s9 + $0x10] sm:$0xff]  ;;  %v3506_v28 = vpack.c.bf16 %v2420_v26, %v2419_v25 }
 0x535   : > { %3499 = vmatprep.subr.bf16.mxu1 %v3642_v3  ;;  %v3509_v29 = vpack.c.bf16 %v2422_v45, %v2421_v27 }
 0x537   : > { %3375 = vmatpush1.bf16.msra.mxu0 %v3374_v33 }
 0x538   : > { %3501 = vmatpush1.bf16.msra.mxu1 %v3500_v34  ;;  %3376 = vmatprep.subr.bf16.mxu0 %v3642_v3 }
 0x539   : > { %3502 = vmatprep.subr.bf16.mxu1 %v3642_v3 }
 0x53b   : > { %3378 = vmatpush1.bf16.msra.mxu0 %v3377_v39  ;;  %v2426_v39 = vld [vmem:[%s5294_s9 + $0x38] sm:$0xff] }
 0x53c   : > { %3504 = vmatpush1.bf16.msra.mxu1 %v3503_v40  ;;  %3421 = vmatprep.subr.bf16.mxu0 %v3642_v3  ;;  %v3515_v40 = vpack.c.bf16 %v2426_v39, %v2425_v38 }
 0x53e   : > { %2095 = vmatmul.mubr.f32.vlgmr.msra.gmra.mrb[16].mxu0 %v2025_v44 }
 0x53f   : > { %2410 = vmatmul.mubr.f32.vlgmr.msra.gmra.mrb[34].mxu1 %v2340_v2  ;;  %3423 = vmatpush1.bf16.msra.mxu0 %v3422_v43 }
 0x540   : > { %2902 = vmatprep.mubr.msk.f32.mxu0 %vm1068_vm4, %v2236_v1  ;;  %3424 = vmatprep.subr.bf16.mxu0 %v3642_v3 }
 0x543   : > { %3426 = vmatpush1.bf16.msra.mxu0 %v3425_v47 }
 0x544   : > { %3427 = vmatprep.subr.bf16.mxu0 %v3642_v3 }
 0x547   : > { %3429 = vmatpush1.bf16.msra.mxu0 %v3428_v50 }
 0x548   : > { %3430 = vmatprep.subr.bf16.mxu0 %v3642_v3 }
 0x54b   : > { %3432 = vmatpush1.bf16.msra.mxu0 %v3431_v52 }
 0x54c   : > { %3433 = vmatprep.subr.bf16.mxu0 %v3642_v3 }
 0x54f   : > { %3435 = vmatpush1.bf16.msra.mxu0 %v3434_v54  ;;  %v2427_v54 = vld [vmem:[%s5295_s10] sm:$0x1] }
 0x550   : > { %3436 = vmatprep.subr.bf16.mxu0 %v3642_v3 }
 0x553   : > { %3438 = vmatpush1.bf16.msra.mxu0 %v3437_v57 }
 0x554   : > { %3439 = vmatprep.subr.bf16.mxu0 %v3642_v3 }
 0x557   : > { %3441 = vmatpush1.bf16.msra.mxu0 %v3440_v60 }
 0x558   : > { %3442 = vmatprep.subr.bf16.mxu0 %v3642_v3 }
 0x55b   : > { %3444 = vmatpush1.bf16.msra.mxu0 %v3443_v63 }
 0x55c   : > { %3445 = vmatprep.subr.bf16.mxu0 %v3642_v3 }
 0x55f   : > { %3447 = vmatpush1.bf16.msra.mxu0 %v3446_v15 }
 0x560   : > { %3448 = vmatprep.subr.bf16.mxu0 %v3642_v3 }
 0x563   : > { %3450 = vmatpush1.bf16.msra.mxu0 %v3449_v6 }
 0x564   : > { %3451 = vmatprep.subr.bf16.mxu0 %v3642_v3 }
 0x567   : > { %3453 = vmatpush1.bf16.msra.mxu0 %v3452_v11 }
 0x568   : > { %3454 = vmatprep.subr.bf16.mxu0 %v3642_v3 }
 0x56b   : > { %3456 = vmatpush1.bf16.msra.mxu0 %v3455_v14 }
 0x56c   : > { %3457 = vmatprep.subr.bf16.mxu0 %v3642_v3 }
 0x56f   : > { %3459 = vmatpush1.bf16.msra.mxu0 %v3458_v18 }
 0x570   : > { %3460 = vmatprep.subr.bf16.mxu0 %v3642_v3 }
 0x573   : > { %3462 = vmatpush1.bf16.msra.mxu0 %v3461_v23 }
 0x574   : > { %3505 = vmatprep.subr.bf16.mxu0 %v3642_v3 }
 0x576   : > { %2305 = vmatmul.mubr.f32.vlgmr.msra.gmra.mrb[18].mxu0 %v2235_v24 }
 0x577   : > { %3507 = vmatpush3.bf16.msra.mxu0 %v3506_v28  ;;  %2962 = vmatprep.mubr.msk.f32.mxu0 %vm3643_vm8, %v3640_v7  ;;  %v2416_v7 = vld [vmem:[%s5293_s8] sm:$0x1] }
 0x578   : > { %3508 = vmatprep.subr.bf16.mxu0 %v3642_v3 }
 0x57b   : > { %3510 = vmatpush3.bf16.msra.mxu0 %v3509_v29 }
 0x57c   : > { %3511 = vmatprep.subr.bf16.mxu0 %v3642_v3 }
 0x57f   : > { %3513 = vmatpush3.bf16.msra.mxu0 %v3512_v37 }
 0x580   : > { %3514 = vmatprep.subr.bf16.mxu0 %v3642_v3 }
 0x583   : > { %3516 = vmatpush3.bf16.msra.mxu0 %v3515_v40 }
 0x5a1   : > { %v1815_v30 = vpop.f32.mrb[12].mxu0  ;;  %v1991_v32 = vpop.f32.mrb[30].mxu1 }
 0x5a2   : > { %v1817_v33 = vpop.f32.mrb[13].mxu0  ;;  %v1993_v34 = vpop.f32.mrb[31].mxu1 }
 0x5d9   : > { %v1887_v41 = vpop.f32.mrb[14].mxu0  ;;  %v2201_v42 = vpop.f32.mrb[32].mxu1 }
 0x5da   : > { %v1888_v43 = vadd.f32 %v1887_v41, %v1815_v30  ;;  %v1889_v44 = vpop.f32.mrb[15].mxu0  ;;  %v2203_v10 = vpop.f32.mrb[33].mxu1 }
 0x5dc   : > { %v1995_v46 = vadd.f32 %v1991_v32, %v1888_v43 }
 0x611   : > { %v2096_v3 = vpop.f32.mrb[16].mxu0 }
 0x612   : > { %v2100_v2 = vadd.f32 %v2096_v3, %v1995_v46  ;;  %v2411_v1 = vpop.f32.mrb[34].mxu1  ;;  %v2098_v47 = vpop.f32.mrb[17].mxu0 }
 0x613   : > { %v2413_v48 = vpop.f32.mrb[35].mxu1 }
 0x614   : > { %v2205_v49 = vadd.f32 %v2201_v42, %v2100_v2 }
 0x649   : > { %v2306_v50 = vpop.f32.mrb[18].mxu0 }
 0x64a   : > { %v2310_v4 = vadd.f32 %v2306_v50, %v2205_v49  ;;  %v2308_v51 = vpop.f32.mrb[19].mxu0 }
 0x64c   : > { %v2415_v52 = vadd.f32 %v2411_v1, %v2310_v4 }
 0x64e   : > { %v2417_v31 = vadd.f32 %v2416_v7, %v2415_v52 }
 0x650   : > { %v2418_v53 = vmax.f32 %v2417_v31, 0.0 }
 0x652   : > { %2963 = vmatmul.mubr.msk.f32.vlgmr.msra.gmra.mrb[20].mxu0 %vm2428_vm9, %v2418_v53 }
 0x725   : > { %v2498_v55 = vpop.f32.mrb[20].mxu0 }
 0x726   : > { %v2499_v56 = vadd.f32 %v2498_v55, %v2427_v54  ;;  %v2964_v57 = vpop.f32.mrb[21].mxu0 }
 0x728   : > { %2503 = vst.msk [vmem:[%s378_s12] sm:$0x1] %vm2502_vm10, %v2499_v56 }
 0x729   : > { %3589 = shalt.err (!%p3586_p3)
}
 0x72a   : > { %s3590_s24 = scalar_lea.hbm %s5243_s25, 16  ;;  %s3594_s12 = scalar_lea.hbm %s5296_s11, 32 }
 0x72b   : > { %p3591_p4 = scmp.ne.s32.totalorder %s5243_s25, %s3590_s24  ;;  %p3595_p9 = scmp.lt.u32.totalorder %s5243_s25, %s5296_s11 }
 0x72c   : > { %p3596_p10 = scmp.lt.u32.totalorder %s3594_s12, %s3590_s24  ;;  %p3598_p12 = scmp.lt.u32.totalorder %s3590_s24, %s5243_s25 }
 0x72d   : > { %p3592_p7 = pnand %p3591_p4, %p3743_p5 }
 0x72e   : > { %p3597_p11 = por %p3596_p10, %p3595_p9 }
 0x72f   : > { %p3593_p8 = pneg %p3592_p7 }
 0x730   : > { %p3599_p13 = por %p3598_p12, %p3597_p11 }
 0x732   : > { %p3600_p0 = pnand %p3599_p13, %p3593_p8 }
 0x734   : > { %3603 = shalt.err (!%p3600_p0)
}
 0x735   : > { %3533 = dma.vmem_to_hbm [thread:$0]  (%p3743_p5), %s5245_s26, 16, %s5243_s25, %s2505_s14  }
 0x736 PF: > { %p3539_p1 = scmp.ge.s32.totalorder %s3638_s20, 2  ;;  %s2529_s15 = sand.u32 1, %s3626_s17  }
 0x737   : > { %s2530_s21 = scalar_lea.sflag [#allocation3], %s2529_s15 }
 0x738   : > { %p3536_p2 = pnand %p3539_p1, %p3747_p6 }
 0x73a   : > { %3621 = dma.done.wait (!%p3536_p2), %s2530_s21, 16  }
 0x73b   : > { %3623 = vsyncadd (!%p3536_p2), %s2530_s21, 4294967280  ;;  %s5306_s22 = sld [smem:[#allocation5_spill]]  ;;  %s5307_s19 = sld [smem:[#allocation6_spill]] }
 0x73c   : > { %p21_p3 = scmp.ge.s32.totalorder %s3730_s23, 4   ;;  %s5308_s17 = smov %s3630_s18 }
 0x73d   : > { %s5310_s20 = smov %s3730_s23 }
 0x73e   :  { %23 = sbr.rel (!%p21_p3) target bundleno = 3 (0x3), region = 113 }
 0x741   : > { %s5309_s18 = smov %s5306_s22 }
 0x745   :  { %2534 = vsyncpa [#allocation3], 1 }
 0x746   :  { %2536 = vsyncpa [#allocation3 + $0x1], 1 }

</bundles_post_ra>
